<compile_context>
chip_gen: v6e
topology: v6e:2x2x1
jax: 0.10.0
libtpu: 0.0.40
codegen_flags: <defaults>
</compile_context>

<pallas_src>
import functools

import jax
import jax.numpy as jnp
from jax.experimental import pallas as pl
from jax.experimental.pallas import tpu as pltpu

# ---- module hyper-parameters (deterministic, from __init__ defaults) --------
NUM_CLASSES = 4
FOCAL_ALPHA = 0.25
FOCAL_GAMMA = 1.0
TVERSKY_ALPHA = 0.5
TVERSKY_BETA = 0.7
BOUNDARY_WEIGHT = 0.2
IGNORE_INDEX = 255

SUBLANES = 32            # sublane rows per tile (uint8/bf16/f32 all tile-aligned)
TILE_PIXELS = 32 * 1024  # pixels per grid step; power of two, mult. of 32*128
NUM_CORE_SPLITS = 1      # set 2 on v7x (two TensorCores) -> CORE_PARALLEL axis
APPROX_RECIPROCAL = False  # True: EUP approx recip for softmax denom (~1e-3 rel)


# ------------------------------- kernel --------------------------------------
def _loss_kernel(logits_ref, targets_ref, cls_ref, sc_ref,
                 tp_acc, ps_acc, oh_acc, f_acc, v_acc, *,
                 num_classes, focal_alpha, focal_gamma, ignore_index,
                 hw, sub, lanes, tiles_per_core, approx_recip):
    p = pl.program_id(0)          # core split (CORE_PARALLEL when splits > 1)
    b = pl.program_id(1)          # batch      (accumulated)
    s = pl.program_id(2)          # spatial tile within this core's share
    nb = pl.num_programs(1)
    ns = pl.num_programs(2)

    # ---- init per-core accumulators at this core's first step ---------------
    @pl.when(jnp.logical_and(b == 0, s == 0))
    def _init():
        tp_acc[...] = jnp.zeros_like(tp_acc)
        ps_acc[...] = jnp.zeros_like(ps_acc)
        oh_acc[...] = jnp.zeros_like(oh_acc)
        f_acc[...] = jnp.zeros_like(f_acc)
        v_acc[...] = jnp.zeros_like(v_acc)

    x = logits_ref[0].astype(jnp.float32)        # (C, SUB, L)
    t = targets_ref[0, 0].astype(jnp.int32)      # (SUB, L)  (uint8 widened)

    # in-bounds (non-padded) mask for this tile, from the global pixel index
    base = (p * tiles_per_core + s) * (sub * lanes)
    sub_i = jax.lax.broadcasted_iota(jnp.int32, (sub, lanes), 0)
    lane_i = jax.lax.broadcasted_iota(jnp.int32, (sub, lanes), 1)
    pv = jnp.where(base + sub_i * lanes + lane_i < hw, 1.0, 0.0)   # (SUB, L)

    # softmax / log-sum-exp over the class (leading) axis
    m = jnp.max(x, axis=0)                       # (SUB, L)
    ez = jnp.exp(x - m[None])                    # (C, SUB, L)
    se = jnp.sum(ez, axis=0)                     # (SUB, L)
    if approx_recip:
        inv_se = pl.reciprocal(se, approx=True)  # single EUP op, no Newton
    else:
        inv_se = 1.0 / se                        # exact; reused across classes
    lse = m + jnp.log(se)                        # (SUB, L)
    probs = ez * inv_se[None]                    # (C, SUB, L)

    tc = jnp.clip(t, 0, num_classes - 1)                     # (SUB, L)
    valid = jnp.where(t == ignore_index, 0.0, pv)             # (SUB, L)

    # tree-fold the lane axis down to 128 lanes (pure VPU adds, full vregs)
    def lane_fold(a):
        w = a.shape[-1]
        while w > 128:
            w //= 2
            a = a[..., :w] + a[..., w:]
        return a

    pt = jnp.zeros((sub, lanes), jnp.float32)     # prob of target class
    xsel = jnp.zeros((sub, lanes), jnp.float32)   # logit of target class
    for c in range(num_classes):                  # static loop, C=4
        oh_c = jnp.where(tc == c, pv, 0.0)        # one-hot row, padding masked
        sel_c = probs[c] * oh_c
        pt = pt + sel_c
        xsel = xsel + x[c] * oh_c
        tp_acc[c] += lane_fold(sel_c)             # per-class TP partials
        oh_acc[c] += lane_fold(oh_c)              # per-class sum(one_hot)
        ps_acc[c] += lane_fold(probs[c] * pv)     # per-class sum(probs)

    # NOTE: the boundary weight_map of the reference module is a no-op (it is
    # != 1.0 only where valid == 0), so it is intentionally omitted.
    ce = lse - xsel                               # -log_softmax[target] >= 0
    one_minus_pt = jnp.maximum(1.0 - pt, 0.0)
    if focal_gamma == 1.0:
        mod = one_minus_pt                        # static gamma==1 fast path
    else:
        mod = jnp.power(one_minus_pt, focal_gamma)
    f_acc[...] += lane_fold((focal_alpha * mod * ce) * valid)
    v_acc[...] += lane_fold(valid)

    # ---- one-time cross-lane reduce + tiny output write, last step only -----
    @pl.when(jnp.logical_and(b == nb - 1, s == ns - 1))
    def _finalize():
        tp = jnp.sum(jnp.sum(tp_acc[...], axis=1), axis=1, keepdims=True)  # (C,1)
        ps = jnp.sum(jnp.sum(ps_acc[...], axis=1), axis=1, keepdims=True)
        oh = jnp.sum(jnp.sum(oh_acc[...], axis=1), axis=1, keepdims=True)
        cls_ref[0, :, 0:1] = tp                           # TP
        cls_ref[0, :, 1:2] = ps - tp                      # FP = sum(p) - TP
        cls_ref[0, :, 2:3] = oh - tp                      # FN = sum(y) - TP
        sc_ref[0, 0:1, 0:1] = jnp.sum(
            jnp.sum(f_acc[...], axis=0, keepdims=True), axis=1, keepdims=True)
        sc_ref[0, 0:1, 1:2] = jnp.sum(
            jnp.sum(v_acc[...], axis=0, keepdims=True), axis=1, keepdims=True)


# -------------------------------- wrapper -------------------------------------
def combined_focal_tversky_loss(logits, targets, *, tile_pixels=TILE_PIXELS,
                                core_splits=NUM_CORE_SPLITS,
                                approx_recip=APPROX_RECIPROCAL):
    """logits: (B, C, H, W) float32/bf16 (NCHW); targets: (B, H, W) int."""
    B, C, H, W = logits.shape
    HW = H * W
    SUB = SUBLANES

    min_tile = SUB * 128
    tile = min(tile_pixels, max(min_tile, pl.next_power_of_2(HW)))
    assert tile % min_tile == 0
    lanes = tile // SUB                                   # power-of-two * 128
    tiles_total = pl.cdiv(HW, tile)
    tiles_per_core = pl.cdiv(tiles_total, core_splits)
    hw_pad = core_splits * tiles_per_core * tile
    n_rows = hw_pad // lanes

    x = logits.reshape(B, C, HW)                  # keep caller dtype (bf16 ok)
    t = targets.reshape(B, 1, HW).astype(jnp.uint8)   # 1 B/px; 255 fits exactly
    if hw_pad != HW:
        x = jnp.pad(x, ((0, 0), (0, 0), (0, hw_pad - HW)))
        t = jnp.pad(t, ((0, 0), (0, 0), (0, hw_pad - HW)))
    x = x.reshape(B, C, n_rows, lanes)            # (SUB rows per tile) x lanes
    t = t.reshape(B, 1, n_rows, lanes)

    kernel = functools.partial(
        _loss_kernel, num_classes=C, focal_alpha=FOCAL_ALPHA,
        focal_gamma=FOCAL_GAMMA, ignore_index=IGNORE_INDEX,
        hw=HW, sub=SUB, lanes=lanes, tiles_per_core=tiles_per_core,
        approx_recip=approx_recip)

    if core_splits > 1:
        dim_sem = (pltpu.CORE_PARALLEL, "arbitrary", "arbitrary")   # v7x 2-TC
    else:
        dim_sem = ("arbitrary", "arbitrary", "arbitrary")

    cls_stats, sc_stats = pl.pallas_call(
        kernel,
        out_shape=(jax.ShapeDtypeStruct((core_splits, C, 3), jnp.float32),
                   jax.ShapeDtypeStruct((core_splits, 1, 2), jnp.float32)),
        grid=(core_splits, B, tiles_per_core),
        in_specs=[
            pl.BlockSpec((1, C, SUB, lanes),
                         lambda p, b, s: (b, 0, p * tiles_per_core + s, 0)),
            pl.BlockSpec((1, 1, SUB, lanes),
                         lambda p, b, s: (b, 0, p * tiles_per_core + s, 0)),
        ],
        out_specs=(
            pl.BlockSpec((1, C, 3), lambda p, b, s: (p, 0, 0)),
            pl.BlockSpec((1, 1, 2), lambda p, b, s: (p, 0, 0)),
        ),
        scratch_shapes=[
            pltpu.VMEM((C, SUB, 128), jnp.float32),   # TP partials
            pltpu.VMEM((C, SUB, 128), jnp.float32),   # sum(probs) partials
            pltpu.VMEM((C, SUB, 128), jnp.float32),   # sum(one_hot) partials
            pltpu.VMEM((SUB, 128), jnp.float32),      # focal numerator partials
            pltpu.VMEM((SUB, 128), jnp.float32),      # valid count partials
        ],
        compiler_params=pltpu.CompilerParams(dimension_semantics=dim_sem),
    )(x, t)

    stats = jnp.sum(cls_stats, axis=0)            # (C, 3) summed over cores
    tp, fp, fn = stats[:, 0], stats[:, 1], stats[:, 2]
    sc = jnp.sum(sc_stats, axis=0)                # (1, 2)
    focal_sum, valid_sum = sc[0, 0], sc[0, 1]

    focal_loss = focal_sum / jnp.maximum(valid_sum, 1e-8)
    tversky = (tp + 1e-6) / (tp + TVERSKY_ALPHA * fp + TVERSKY_BETA * fn + 1e-6)
    tversky_loss = 1.0 - jnp.mean(tversky)
    return 0.5 * focal_loss + 0.5 * tversky_loss


# ---------------------- pure-JAX reference (for checking) --------------------
def _boundary_mask(targets, ignore_index):
    # scipy.ndimage.binary_dilation(mask, iterations=1), cross SE, border 0.
    mask = targets != ignore_index
    p = jnp.pad(mask, ((0, 0), (1, 1), (1, 1)), constant_values=False)
    dil = (p[:, 1:-1, 1:-1] | p[:, :-2, 1:-1] | p[:, 2:, 1:-1]
           | p[:, 1:-1, :-2] | p[:, 1:-1, 2:])
    return (dil & ~mask).astype(jnp.float32)


def reference_loss(logits, targets):
    # Mirrors the PyTorch forward (including the no-op boundary weight_map),
    # minus the undefined SoftBoundaryDiceLoss term.
    C = logits.shape[1]
    valid = (targets != IGNORE_INDEX).astype(jnp.float32)
    logp = jax.nn.log_softmax(logits.astype(jnp.float32), axis=1)
    tc = jnp.clip(targets, 0, C - 1)
    ce = -jnp.take_along_axis(logp, tc[:, None], axis=1)[:, 0] * valid
    pt = jnp.exp(-ce)
    focal = FOCAL_ALPHA * (1.0 - pt) ** FOCAL_GAMMA * ce
    bnd = _boundary_mask(targets, IGNORE_INDEX)
    wm = jnp.where(bnd > 0.5, BOUNDARY_WEIGHT, 1.0)
    focal_loss = (focal * valid * wm).sum() / jnp.maximum((valid * wm).sum(), 1e-8)
    probs = jax.nn.softmax(logits.astype(jnp.float32), axis=1)
    oh = jax.nn.one_hot(tc, C, dtype=jnp.float32).transpose(0, 3, 1, 2)
    dims = (0, 2, 3)
    TP = (probs * oh).sum(dims)
    FP = (probs * (1.0 - oh)).sum(dims)
    FN = ((1.0 - probs) * oh).sum(dims)
    tv = (TP + 1e-6) / (TP + TVERSKY_ALPHA * FP + TVERSKY_BETA * FN + 1e-6)
    return 0.5 * focal_loss + 0.5 * (1.0 - jnp.mean(tv))


if __name__ == "__main__":
    key = jax.random.PRNGKey(0)
    k1, k2 = jax.random.split(key)
    B, C, H, W = 2, NUM_CLASSES, 16, 16

    logits = jax.random.normal(k1, (B, C, H, W), dtype=jnp.float32)
    targets = jax.random.randint(k2, (B, H, W), 0, C, dtype=jnp.int32)
    targets = targets.at[:, :3, :].set(IGNORE_INDEX)  # some ignored pixels

    out = combined_focal_tversky_loss(logits, targets)
    out = jax.block_until_ready(out)

    ref = reference_loss(logits, targets)
    # Tight tolerance is valid with APPROX_RECIPROCAL=False (exact softmax);
    # loosen to ~2e-3 if the approx EUP reciprocal path is enabled.
    assert jnp.allclose(out, ref, atol=1e-5, rtol=1e-5), (out, ref)
    print("KERNEL_OK")
</pallas_src>

<mosaic_0001>
module attributes {stable_mosaic.version = 11 : i64} {
  func.func @_loss_kernel(%arg0: i32, %arg1: i32, %arg2: i32, %arg3: memref<1x4x32x128xf32, #tpu.memory_space<vmem>>, %arg4: memref<1x1x32x128xi8, #tpu.memory_space<vmem>>, %arg5: memref<1x4x3xf32, #tpu.memory_space<vmem>>, %arg6: memref<1x1x2xf32, #tpu.memory_space<vmem>>, %arg7: memref<4x32x128xf32, #tpu.memory_space<vmem>>, %arg8: memref<4x32x128xf32, #tpu.memory_space<vmem>>, %arg9: memref<4x32x128xf32, #tpu.memory_space<vmem>>, %arg10: memref<32x128xf32, #tpu.memory_space<vmem>>, %arg11: memref<32x128xf32, #tpu.memory_space<vmem>>) attributes {dimension_semantics = [#tpu.dimension_semantics<arbitrary>, #tpu.dimension_semantics<arbitrary>, #tpu.dimension_semantics<arbitrary>], iteration_bounds = array<i64: 1, 2, 1>, scalar_prefetch = 0 : i64, scratch_operands = 5 : i64, tpu.core_type = #tpu.core_type<tc>, window_params = [{transform_indices = @transform_0, window_bounds = array<i64: 1, 4, 32, 128>}, {transform_indices = @transform_1, window_bounds = array<i64: 1, 1, 32, 128>}, {transform_indices = @transform_2, window_bounds = array<i64: 1, 4, 3>}, {transform_indices = @transform_3, window_bounds = array<i64: 1, 1, 2>}]} {
    %c0_i32 = arith.constant 0 : i32
    %0 = arith.cmpi eq, %arg1, %c0_i32 : i32
    %c0_i32_0 = arith.constant 0 : i32
    %1 = arith.cmpi eq, %arg2, %c0_i32_0 : i32
    %2 = arith.andi %0, %1 : i1
    %3 = arith.extui %2 : i1 to i32
    %c0_i32_1 = arith.constant 0 : i32
    %4 = arith.cmpi ne, %3, %c0_i32_1 : i32
    scf.if %4 {
      %cst_107 = arith.constant 0.000000e+00 : f32
      %200 = vector.broadcast %cst_107 : f32 to vector<4x32x128xf32>
      %c0_108 = arith.constant 0 : index
      %c0_109 = arith.constant 0 : index
      %c0_110 = arith.constant 0 : index
      %201 = vector.load %arg7[%c0_108, %c0_109, %c0_110] : memref<4x32x128xf32, #tpu.memory_space<vmem>>, vector<4x32x128xf32>
      tpu.vector_store %arg7[%c0_108, %c0_109, %c0_110], %200 {strides = array<i32>} : memref<4x32x128xf32, #tpu.memory_space<vmem>>, vector<4x32x128xf32>,
      %cst_111 = arith.constant 0.000000e+00 : f32
      %202 = vector.broadcast %cst_111 : f32 to vector<4x32x128xf32>
      %c0_112 = arith.constant 0 : index
      %c0_113 = arith.constant 0 : index
      %c0_114 = arith.constant 0 : index
      %203 = vector.load %arg8[%c0_112, %c0_113, %c0_114] : memref<4x32x128xf32, #tpu.memory_space<vmem>>, vector<4x32x128xf32>
      tpu.vector_store %arg8[%c0_112, %c0_113, %c0_114], %202 {strides = array<i32>} : memref<4x32x128xf32, #tpu.memory_space<vmem>>, vector<4x32x128xf32>,
      %cst_115 = arith.constant 0.000000e+00 : f32
      %204 = vector.broadcast %cst_115 : f32 to vector<4x32x128xf32>
      %c0_116 = arith.constant 0 : index
      %c0_117 = arith.constant 0 : index
      %c0_118 = arith.constant 0 : index
      %205 = vector.load %arg9[%c0_116, %c0_117, %c0_118] : memref<4x32x128xf32, #tpu.memory_space<vmem>>, vector<4x32x128xf32>
      tpu.vector_store %arg9[%c0_116, %c0_117, %c0_118], %204 {strides = array<i32>} : memref<4x32x128xf32, #tpu.memory_space<vmem>>, vector<4x32x128xf32>,
      %cst_119 = arith.constant 0.000000e+00 : f32
      %206 = vector.broadcast %cst_119 : f32 to vector<32x128xf32>
      %c0_120 = arith.constant 0 : index
      %c0_121 = arith.constant 0 : index
      %207 = vector.load %arg10[%c0_120, %c0_121] : memref<32x128xf32, #tpu.memory_space<vmem>>, vector<32x128xf32>
      tpu.vector_store %arg10[%c0_120, %c0_121], %206 {strides = array<i32>} : memref<32x128xf32, #tpu.memory_space<vmem>>, vector<32x128xf32>,
      %cst_122 = arith.constant 0.000000e+00 : f32
      %208 = vector.broadcast %cst_122 : f32 to vector<32x128xf32>
      %c0_123 = arith.constant 0 : index
      %c0_124 = arith.constant 0 : index
      %209 = vector.load %arg11[%c0_123, %c0_124] : memref<32x128xf32, #tpu.memory_space<vmem>>, vector<32x128xf32>
      tpu.vector_store %arg11[%c0_123, %c0_124], %208 {strides = array<i32>} : memref<32x128xf32, #tpu.memory_space<vmem>>, vector<32x128xf32>,
    } else {
    }
    %c0 = arith.constant 0 : index
    %c0_2 = arith.constant 0 : index
    %c0_3 = arith.constant 0 : index
    %c0_4 = arith.constant 0 : index
    %5 = vector.load %arg3[%c0, %c0_2, %c0_3, %c0_4] : memref<1x4x32x128xf32, #tpu.memory_space<vmem>>, vector<1x4x32x128xf32>
    %6 = vector.shape_cast %5 : vector<1x4x32x128xf32> to vector<4x32x128xf32>
    %c0_5 = arith.constant 0 : index
    %c0_6 = arith.constant 0 : index
    %c0_7 = arith.constant 0 : index
    %c0_8 = arith.constant 0 : index
    %7 = vector.load %arg4[%c0_5, %c0_6, %c0_7, %c0_8] : memref<1x1x32x128xi8, #tpu.memory_space<vmem>>, vector<1x1x32x128xi8>
    %8 = vector.shape_cast %7 : vector<1x1x32x128xi8> to vector<32x128xi8>
    %9 = arith.extui %8 : vector<32x128xi8> to vector<32x128xi32>
    %c1_i32 = arith.constant 1 : i32
    %10 = arith.muli %arg0, %c1_i32 : i32
    %11 = arith.addi %10, %arg2 : i32
    %c4096_i32 = arith.constant 4096 : i32
    %12 = arith.muli %11, %c4096_i32 : i32
    %13 = tpu.iota {dimensions = array<i32: 0>} : vector<32x128xi32>
    %14 = tpu.iota {dimensions = array<i32: 1>} : vector<32x128xi32>
    %c128_i32 = arith.constant 128 : i32
    %15 = vector.broadcast %c128_i32 : i32 to vector<32x128xi32>
    %16 = arith.muli %13, %15 : vector<32x128xi32>
    %17 = vector.broadcast %12 : i32 to vector<32x128xi32>
    %18 = arith.addi %17, %16 : vector<32x128xi32>
    %19 = arith.addi %18, %14 : vector<32x128xi32>
    %c256_i32 = arith.constant 256 : i32
    %20 = vector.broadcast %c256_i32 : i32 to vector<32x128xi32>
    %21 = arith.cmpi slt, %19, %20 : vector<32x128xi32>
    %cst = arith.constant 1.000000e+00 : f32
    %cst_9 = arith.constant 0.000000e+00 : f32
    %22 = vector.broadcast %cst : f32 to vector<32x128xf32>
    %23 = vector.broadcast %cst_9 : f32 to vector<32x128xf32>
    %24 = arith.select %21, %22, %23 : vector<32x128xi1>, vector<32x128xf32>
    %cst_10 = arith.constant dense<0xFF800000> : vector<32x128xf32>
    %25 = vector.multi_reduction <maximumf>, %6, %cst_10 [0] : vector<4x32x128xf32> to vector<32x128xf32>
    %26 = vector.shape_cast %25 : vector<32x128xf32> to vector<1x32x128xf32>
    %27 = vector.broadcast %26 : vector<1x32x128xf32> to vector<4x32x128xf32>
    %28 = arith.subf %6, %27 : vector<4x32x128xf32>
    %29 = math.exp %28 : vector<4x32x128xf32>
    %cst_11 = arith.constant dense<0.000000e+00> : vector<32x128xf32>
    %30 = vector.multi_reduction <add>, %29, %cst_11 [0] : vector<4x32x128xf32> to vector<32x128xf32>
    %cst_12 = arith.constant 1.000000e+00 : f32
    %31 = vector.broadcast %cst_12 : f32 to vector<32x128xf32>
    %32 = arith.divf %31, %30 : vector<32x128xf32>
    %33 = math.log %30 : vector<32x128xf32>
    %34 = arith.addf %25, %33 : vector<32x128xf32>
    %35 = vector.shape_cast %32 : vector<32x128xf32> to vector<1x32x128xf32>
    %36 = vector.broadcast %35 : vector<1x32x128xf32> to vector<4x32x128xf32>
    %37 = arith.mulf %29, %36 : vector<4x32x128xf32>
    %c0_i32_13 = arith.constant 0 : i32
    %c3_i32 = arith.constant 3 : i32
    %38 = vector.broadcast %c0_i32_13 : i32 to vector<32x128xi32>
    %39 = arith.maxsi %38, %9 : vector<32x128xi32>
    %40 = vector.broadcast %c3_i32 : i32 to vector<32x128xi32>
    %41 = arith.minsi %40, %39 : vector<32x128xi32>
    %c255_i32 = arith.constant 255 : i32
    %42 = vector.broadcast %c255_i32 : i32 to vector<32x128xi32>
    %43 = arith.cmpi eq, %9, %42 : vector<32x128xi32>
    %cst_14 = arith.constant 0.000000e+00 : f32
    %44 = vector.broadcast %cst_14 : f32 to vector<32x128xf32>
    %45 = arith.select %43, %44, %24 : vector<32x128xi1>, vector<32x128xf32>
    %cst_15 = arith.constant 0.000000e+00 : f32
    %46 = vector.broadcast %cst_15 : f32 to vector<32x128xf32>
    %cst_16 = arith.constant 0.000000e+00 : f32
    %47 = vector.broadcast %cst_16 : f32 to vector<32x128xf32>
    %c0_i32_17 = arith.constant 0 : i32
    %48 = vector.broadcast %c0_i32_17 : i32 to vector<32x128xi32>
    %49 = arith.cmpi eq, %41, %48 : vector<32x128xi32>
    %cst_18 = arith.constant 0.000000e+00 : f32
    %50 = vector.broadcast %cst_18 : f32 to vector<32x128xf32>
    %51 = arith.select %49, %24, %50 : vector<32x128xi1>, vector<32x128xf32>
    %52 = vector.extract_strided_slice %37 {offsets = [0, 0, 0], sizes = [1, 32, 128], strides = [1, 1, 1]} : vector<4x32x128xf32> to vector<1x32x128xf32>
    %53 = vector.shape_cast %52 : vector<1x32x128xf32> to vector<32x128xf32>
    %54 = arith.mulf %53, %51 : vector<32x128xf32>
    %55 = arith.addf %46, %54 : vector<32x128xf32>
    %56 = vector.extract_strided_slice %6 {offsets = [0, 0, 0], sizes = [1, 32, 128], strides = [1, 1, 1]} : vector<4x32x128xf32> to vector<1x32x128xf32>
    %57 = vector.shape_cast %56 : vector<1x32x128xf32> to vector<32x128xf32>
    %58 = arith.mulf %57, %51 : vector<32x128xf32>
    %59 = arith.addf %47, %58 : vector<32x128xf32>
    %c0_19 = arith.constant 0 : index
    %c0_20 = arith.constant 0 : index
    %c0_21 = arith.constant 0 : index
    %60 = vector.load %arg7[%c0_19, %c0_20, %c0_21] : memref<4x32x128xf32, #tpu.memory_space<vmem>>, vector<1x32x128xf32>
    %61 = vector.shape_cast %60 : vector<1x32x128xf32> to vector<32x128xf32>
    %62 = arith.addf %61, %54 : vector<32x128xf32>
    %c0_22 = arith.constant 0 : index
    %c0_23 = arith.constant 0 : index
    %c0_24 = arith.constant 0 : index
    %63 = vector.load %arg7[%c0_22, %c0_23, %c0_24] : memref<4x32x128xf32, #tpu.memory_space<vmem>>, vector<1x32x128xf32>
    %64 = vector.shape_cast %63 : vector<1x32x128xf32> to vector<32x128xf32>
    %65 = vector.shape_cast %62 : vector<32x128xf32> to vector<1x32x128xf32>
    tpu.vector_store %arg7[%c0_22, %c0_23, %c0_24], %65 {strides = array<i32>} : memref<4x32x128xf32, #tpu.memory_space<vmem>>, vector<1x32x128xf32>,
    %c0_25 = arith.constant 0 : index
    %c0_26 = arith.constant 0 : index
    %c0_27 = arith.constant 0 : index
    %66 = vector.load %arg9[%c0_25, %c0_26, %c0_27] : memref<4x32x128xf32, #tpu.memory_space<vmem>>, vector<1x32x128xf32>
    %67 = vector.shape_cast %66 : vector<1x32x128xf32> to vector<32x128xf32>
    %68 = arith.addf %67, %51 : vector<32x128xf32>
    %c0_28 = arith.constant 0 : index
    %c0_29 = arith.constant 0 : index
    %c0_30 = arith.constant 0 : index
    %69 = vector.load %arg9[%c0_28, %c0_29, %c0_30] : memref<4x32x128xf32, #tpu.memory_space<vmem>>, vector<1x32x128xf32>
    %70 = vector.shape_cast %69 : vector<1x32x128xf32> to vector<32x128xf32>
    %71 = vector.shape_cast %68 : vector<32x128xf32> to vector<1x32x128xf32>
    tpu.vector_store %arg9[%c0_28, %c0_29, %c0_30], %71 {strides = array<i32>} : memref<4x32x128xf32, #tpu.memory_space<vmem>>, vector<1x32x128xf32>,
    %c0_31 = arith.constant 0 : index
    %c0_32 = arith.constant 0 : index
    %c0_33 = arith.constant 0 : index
    %72 = vector.load %arg8[%c0_31, %c0_32, %c0_33] : memref<4x32x128xf32, #tpu.memory_space<vmem>>, vector<1x32x128xf32>
    %73 = vector.shape_cast %72 : vector<1x32x128xf32> to vector<32x128xf32>
    %74 = vector.extract_strided_slice %37 {offsets = [0, 0, 0], sizes = [1, 32, 128], strides = [1, 1, 1]} : vector<4x32x128xf32> to vector<1x32x128xf32>
    %75 = vector.shape_cast %74 : vector<1x32x128xf32> to vector<32x128xf32>
    %76 = arith.mulf %75, %24 : vector<32x128xf32>
    %77 = arith.addf %73, %76 : vector<32x128xf32>
    %c0_34 = arith.constant 0 : index
    %c0_35 = arith.constant 0 : index
    %c0_36 = arith.constant 0 : index
    %78 = vector.load %arg8[%c0_34, %c0_35, %c0_36] : memref<4x32x128xf32, #tpu.memory_space<vmem>>, vector<1x32x128xf32>
    %79 = vector.shape_cast %78 : vector<1x32x128xf32> to vector<32x128xf32>
    %80 = vector.shape_cast %77 : vector<32x128xf32> to vector<1x32x128xf32>
    tpu.vector_store %arg8[%c0_34, %c0_35, %c0_36], %80 {strides = array<i32>} : memref<4x32x128xf32, #tpu.memory_space<vmem>>, vector<1x32x128xf32>,
    %c1_i32_37 = arith.constant 1 : i32
    %81 = vector.broadcast %c1_i32_37 : i32 to vector<32x128xi32>
    %82 = arith.cmpi eq, %41, %81 : vector<32x128xi32>
    %cst_38 = arith.constant 0.000000e+00 : f32
    %83 = vector.broadcast %cst_38 : f32 to vector<32x128xf32>
    %84 = arith.select %82, %24, %83 : vector<32x128xi1>, vector<32x128xf32>
    %85 = vector.extract_strided_slice %37 {offsets = [1, 0, 0], sizes = [1, 32, 128], strides = [1, 1, 1]} : vector<4x32x128xf32> to vector<1x32x128xf32>
    %86 = vector.shape_cast %85 : vector<1x32x128xf32> to vector<32x128xf32>
    %87 = arith.mulf %86, %84 : vector<32x128xf32>
    %88 = arith.addf %55, %87 : vector<32x128xf32>
    %89 = vector.extract_strided_slice %6 {offsets = [1, 0, 0], sizes = [1, 32, 128], strides = [1, 1, 1]} : vector<4x32x128xf32> to vector<1x32x128xf32>
    %90 = vector.shape_cast %89 : vector<1x32x128xf32> to vector<32x128xf32>
    %91 = arith.mulf %90, %84 : vector<32x128xf32>
    %92 = arith.addf %59, %91 : vector<32x128xf32>
    %c1 = arith.constant 1 : index
    %c0_39 = arith.constant 0 : index
    %c0_40 = arith.constant 0 : index
    %93 = vector.load %arg7[%c1, %c0_39, %c0_40] : memref<4x32x128xf32, #tpu.memory_space<vmem>>, vector<1x32x128xf32>
    %94 = vector.shape_cast %93 : vector<1x32x128xf32> to vector<32x128xf32>
    %95 = arith.addf %94, %87 : vector<32x128xf32>
    %c1_41 = arith.constant 1 : index
    %c0_42 = arith.constant 0 : index
    %c0_43 = arith.constant 0 : index
    %96 = vector.load %arg7[%c1_41, %c0_42, %c0_43] : memref<4x32x128xf32, #tpu.memory_space<vmem>>, vector<1x32x128xf32>
    %97 = vector.shape_cast %96 : vector<1x32x128xf32> to vector<32x128xf32>
    %98 = vector.shape_cast %95 : vector<32x128xf32> to vector<1x32x128xf32>
    tpu.vector_store %arg7[%c1_41, %c0_42, %c0_43], %98 {strides = array<i32>} : memref<4x32x128xf32, #tpu.memory_space<vmem>>, vector<1x32x128xf32>,
    %c1_44 = arith.constant 1 : index
    %c0_45 = arith.constant 0 : index
    %c0_46 = arith.constant 0 : index
    %99 = vector.load %arg9[%c1_44, %c0_45, %c0_46] : memref<4x32x128xf32, #tpu.memory_space<vmem>>, vector<1x32x128xf32>
    %100 = vector.shape_cast %99 : vector<1x32x128xf32> to vector<32x128xf32>
    %101 = arith.addf %100, %84 : vector<32x128xf32>
    %c1_47 = arith.constant 1 : index
    %c0_48 = arith.constant 0 : index
    %c0_49 = arith.constant 0 : index
    %102 = vector.load %arg9[%c1_47, %c0_48, %c0_49] : memref<4x32x128xf32, #tpu.memory_space<vmem>>, vector<1x32x128xf32>
    %103 = vector.shape_cast %102 : vector<1x32x128xf32> to vector<32x128xf32>
    %104 = vector.shape_cast %101 : vector<32x128xf32> to vector<1x32x128xf32>
    tpu.vector_store %arg9[%c1_47, %c0_48, %c0_49], %104 {strides = array<i32>} : memref<4x32x128xf32, #tpu.memory_space<vmem>>, vector<1x32x128xf32>,
    %c1_50 = arith.constant 1 : index
    %c0_51 = arith.constant 0 : index
    %c0_52 = arith.constant 0 : index
    %105 = vector.load %arg8[%c1_50, %c0_51, %c0_52] : memref<4x32x128xf32, #tpu.memory_space<vmem>>, vector<1x32x128xf32>
    %106 = vector.shape_cast %105 : vector<1x32x128xf32> to vector<32x128xf32>
    %107 = vector.extract_strided_slice %37 {offsets = [1, 0, 0], sizes = [1, 32, 128], strides = [1, 1, 1]} : vector<4x32x128xf32> to vector<1x32x128xf32>
    %108 = vector.shape_cast %107 : vector<1x32x128xf32> to vector<32x128xf32>
    %109 = arith.mulf %108, %24 : vector<32x128xf32>
    %110 = arith.addf %106, %109 : vector<32x128xf32>
    %c1_53 = arith.constant 1 : index
    %c0_54 = arith.constant 0 : index
    %c0_55 = arith.constant 0 : index
    %111 = vector.load %arg8[%c1_53, %c0_54, %c0_55] : memref<4x32x128xf32, #tpu.memory_space<vmem>>, vector<1x32x128xf32>
    %112 = vector.shape_cast %111 : vector<1x32x128xf32> to vector<32x128xf32>
    %113 = vector.shape_cast %110 : vector<32x128xf32> to vector<1x32x128xf32>
    tpu.vector_store %arg8[%c1_53, %c0_54, %c0_55], %113 {strides = array<i32>} : memref<4x32x128xf32, #tpu.memory_space<vmem>>, vector<1x32x128xf32>,
    %c2_i32 = arith.constant 2 : i32
    %114 = vector.broadcast %c2_i32 : i32 to vector<32x128xi32>
    %115 = arith.cmpi eq, %41, %114 : vector<32x128xi32>
    %cst_56 = arith.constant 0.000000e+00 : f32
    %116 = vector.broadcast %cst_56 : f32 to vector<32x128xf32>
    %117 = arith.select %115, %24, %116 : vector<32x128xi1>, vector<32x128xf32>
    %118 = vector.extract_strided_slice %37 {offsets = [2, 0, 0], sizes = [1, 32, 128], strides = [1, 1, 1]} : vector<4x32x128xf32> to vector<1x32x128xf32>
    %119 = vector.shape_cast %118 : vector<1x32x128xf32> to vector<32x128xf32>
    %120 = arith.mulf %119, %117 : vector<32x128xf32>
    %121 = arith.addf %88, %120 : vector<32x128xf32>
    %122 = vector.extract_strided_slice %6 {offsets = [2, 0, 0], sizes = [1, 32, 128], strides = [1, 1, 1]} : vector<4x32x128xf32> to vector<1x32x128xf32>
    %123 = vector.shape_cast %122 : vector<1x32x128xf32> to vector<32x128xf32>
    %124 = arith.mulf %123, %117 : vector<32x128xf32>
    %125 = arith.addf %92, %124 : vector<32x128xf32>
    %c2 = arith.constant 2 : index
    %c0_57 = arith.constant 0 : index
    %c0_58 = arith.constant 0 : index
    %126 = vector.load %arg7[%c2, %c0_57, %c0_58] : memref<4x32x128xf32, #tpu.memory_space<vmem>>, vector<1x32x128xf32>
    %127 = vector.shape_cast %126 : vector<1x32x128xf32> to vector<32x128xf32>
    %128 = arith.addf %127, %120 : vector<32x128xf32>
    %c2_59 = arith.constant 2 : index
    %c0_60 = arith.constant 0 : index
    %c0_61 = arith.constant 0 : index
    %129 = vector.load %arg7[%c2_59, %c0_60, %c0_61] : memref<4x32x128xf32, #tpu.memory_space<vmem>>, vector<1x32x128xf32>
    %130 = vector.shape_cast %129 : vector<1x32x128xf32> to vector<32x128xf32>
    %131 = vector.shape_cast %128 : vector<32x128xf32> to vector<1x32x128xf32>
    tpu.vector_store %arg7[%c2_59, %c0_60, %c0_61], %131 {strides = array<i32>} : memref<4x32x128xf32, #tpu.memory_space<vmem>>, vector<1x32x128xf32>,
    %c2_62 = arith.constant 2 : index
    %c0_63 = arith.constant 0 : index
    %c0_64 = arith.constant 0 : index
    %132 = vector.load %arg9[%c2_62, %c0_63, %c0_64] : memref<4x32x128xf32, #tpu.memory_space<vmem>>, vector<1x32x128xf32>
    %133 = vector.shape_cast %132 : vector<1x32x128xf32> to vector<32x128xf32>
    %134 = arith.addf %133, %117 : vector<32x128xf32>
    %c2_65 = arith.constant 2 : index
    %c0_66 = arith.constant 0 : index
    %c0_67 = arith.constant 0 : index
    %135 = vector.load %arg9[%c2_65, %c0_66, %c0_67] : memref<4x32x128xf32, #tpu.memory_space<vmem>>, vector<1x32x128xf32>
    %136 = vector.shape_cast %135 : vector<1x32x128xf32> to vector<32x128xf32>
    %137 = vector.shape_cast %134 : vector<32x128xf32> to vector<1x32x128xf32>
    tpu.vector_store %arg9[%c2_65, %c0_66, %c0_67], %137 {strides = array<i32>} : memref<4x32x128xf32, #tpu.memory_space<vmem>>, vector<1x32x128xf32>,
    %c2_68 = arith.constant 2 : index
    %c0_69 = arith.constant 0 : index
    %c0_70 = arith.constant 0 : index
    %138 = vector.load %arg8[%c2_68, %c0_69, %c0_70] : memref<4x32x128xf32, #tpu.memory_space<vmem>>, vector<1x32x128xf32>
    %139 = vector.shape_cast %138 : vector<1x32x128xf32> to vector<32x128xf32>
    %140 = vector.extract_strided_slice %37 {offsets = [2, 0, 0], sizes = [1, 32, 128], strides = [1, 1, 1]} : vector<4x32x128xf32> to vector<1x32x128xf32>
    %141 = vector.shape_cast %140 : vector<1x32x128xf32> to vector<32x128xf32>
    %142 = arith.mulf %141, %24 : vector<32x128xf32>
    %143 = arith.addf %139, %142 : vector<32x128xf32>
    %c2_71 = arith.constant 2 : index
    %c0_72 = arith.constant 0 : index
    %c0_73 = arith.constant 0 : index
    %144 = vector.load %arg8[%c2_71, %c0_72, %c0_73] : memref<4x32x128xf32, #tpu.memory_space<vmem>>, vector<1x32x128xf32>
    %145 = vector.shape_cast %144 : vector<1x32x128xf32> to vector<32x128xf32>
    %146 = vector.shape_cast %143 : vector<32x128xf32> to vector<1x32x128xf32>
    tpu.vector_store %arg8[%c2_71, %c0_72, %c0_73], %146 {strides = array<i32>} : memref<4x32x128xf32, #tpu.memory_space<vmem>>, vector<1x32x128xf32>,
    %c3_i32_74 = arith.constant 3 : i32
    %147 = vector.broadcast %c3_i32_74 : i32 to vector<32x128xi32>
    %148 = arith.cmpi eq, %41, %147 : vector<32x128xi32>
    %cst_75 = arith.constant 0.000000e+00 : f32
    %149 = vector.broadcast %cst_75 : f32 to vector<32x128xf32>
    %150 = arith.select %148, %24, %149 : vector<32x128xi1>, vector<32x128xf32>
    %151 = vector.extract_strided_slice %37 {offsets = [3, 0, 0], sizes = [1, 32, 128], strides = [1, 1, 1]} : vector<4x32x128xf32> to vector<1x32x128xf32>
    %152 = vector.shape_cast %151 : vector<1x32x128xf32> to vector<32x128xf32>
    %153 = arith.mulf %152, %150 : vector<32x128xf32>
    %154 = arith.addf %121, %153 : vector<32x128xf32>
    %155 = vector.extract_strided_slice %6 {offsets = [3, 0, 0], sizes = [1, 32, 128], strides = [1, 1, 1]} : vector<4x32x128xf32> to vector<1x32x128xf32>
    %156 = vector.shape_cast %155 : vector<1x32x128xf32> to vector<32x128xf32>
    %157 = arith.mulf %156, %150 : vector<32x128xf32>
    %158 = arith.addf %125, %157 : vector<32x128xf32>
    %c3 = arith.constant 3 : index
    %c0_76 = arith.constant 0 : index
    %c0_77 = arith.constant 0 : index
    %159 = vector.load %arg7[%c3, %c0_76, %c0_77] : memref<4x32x128xf32, #tpu.memory_space<vmem>>, vector<1x32x128xf32>
    %160 = vector.shape_cast %159 : vector<1x32x128xf32> to vector<32x128xf32>
    %161 = arith.addf %160, %153 : vector<32x128xf32>
    %c3_78 = arith.constant 3 : index
    %c0_79 = arith.constant 0 : index
    %c0_80 = arith.constant 0 : index
    %162 = vector.load %arg7[%c3_78, %c0_79, %c0_80] : memref<4x32x128xf32, #tpu.memory_space<vmem>>, vector<1x32x128xf32>
    %163 = vector.shape_cast %162 : vector<1x32x128xf32> to vector<32x128xf32>
    %164 = vector.shape_cast %161 : vector<32x128xf32> to vector<1x32x128xf32>
    tpu.vector_store %arg7[%c3_78, %c0_79, %c0_80], %164 {strides = array<i32>} : memref<4x32x128xf32, #tpu.memory_space<vmem>>, vector<1x32x128xf32>,
    %c3_81 = arith.constant 3 : index
    %c0_82 = arith.constant 0 : index
    %c0_83 = arith.constant 0 : index
    %165 = vector.load %arg9[%c3_81, %c0_82, %c0_83] : memref<4x32x128xf32, #tpu.memory_space<vmem>>, vector<1x32x128xf32>
    %166 = vector.shape_cast %165 : vector<1x32x128xf32> to vector<32x128xf32>
    %167 = arith.addf %166, %150 : vector<32x128xf32>
    %c3_84 = arith.constant 3 : index
    %c0_85 = arith.constant 0 : index
    %c0_86 = arith.constant 0 : index
    %168 = vector.load %arg9[%c3_84, %c0_85, %c0_86] : memref<4x32x128xf32, #tpu.memory_space<vmem>>, vector<1x32x128xf32>
    %169 = vector.shape_cast %168 : vector<1x32x128xf32> to vector<32x128xf32>
    %170 = vector.shape_cast %167 : vector<32x128xf32> to vector<1x32x128xf32>
    tpu.vector_store %arg9[%c3_84, %c0_85, %c0_86], %170 {strides = array<i32>} : memref<4x32x128xf32, #tpu.memory_space<vmem>>, vector<1x32x128xf32>,
    %c3_87 = arith.constant 3 : index
    %c0_88 = arith.constant 0 : index
    %c0_89 = arith.constant 0 : index
    %171 = vector.load %arg8[%c3_87, %c0_88, %c0_89] : memref<4x32x128xf32, #tpu.memory_space<vmem>>, vector<1x32x128xf32>
    %172 = vector.shape_cast %171 : vector<1x32x128xf32> to vector<32x128xf32>
    %173 = vector.extract_strided_slice %37 {offsets = [3, 0, 0], sizes = [1, 32, 128], strides = [1, 1, 1]} : vector<4x32x128xf32> to vector<1x32x128xf32>
    %174 = vector.shape_cast %173 : vector<1x32x128xf32> to vector<32x128xf32>
    %175 = arith.mulf %174, %24 : vector<32x128xf32>
    %176 = arith.addf %172, %175 : vector<32x128xf32>
    %c3_90 = arith.constant 3 : index
    %c0_91 = arith.constant 0 : index
    %c0_92 = arith.constant 0 : index
    %177 = vector.load %arg8[%c3_90, %c0_91, %c0_92] : memref<4x32x128xf32, #tpu.memory_space<vmem>>, vector<1x32x128xf32>
    %178 = vector.shape_cast %177 : vector<1x32x128xf32> to vector<32x128xf32>
    %179 = vector.shape_cast %176 : vector<32x128xf32> to vector<1x32x128xf32>
    tpu.vector_store %arg8[%c3_90, %c0_91, %c0_92], %179 {strides = array<i32>} : memref<4x32x128xf32, #tpu.memory_space<vmem>>, vector<1x32x128xf32>,
    %180 = arith.subf %34, %158 : vector<32x128xf32>
    %cst_93 = arith.constant 1.000000e+00 : f32
    %181 = vector.broadcast %cst_93 : f32 to vector<32x128xf32>
    %182 = arith.subf %181, %154 : vector<32x128xf32>
    %cst_94 = arith.constant 0.000000e+00 : f32
    %183 = vector.broadcast %cst_94 : f32 to vector<32x128xf32>
    %184 = arith.maximumf %182, %183 : vector<32x128xf32>
    %c0_95 = arith.constant 0 : index
    %c0_96 = arith.constant 0 : index
    %185 = vector.load %arg10[%c0_95, %c0_96] : memref<32x128xf32, #tpu.memory_space<vmem>>, vector<32x128xf32>
    %cst_97 = arith.constant 2.500000e-01 : f32
    %186 = vector.broadcast %cst_97 : f32 to vector<32x128xf32>
    %187 = arith.mulf %186, %184 : vector<32x128xf32>
    %188 = arith.mulf %187, %180 : vector<32x128xf32>
    %189 = arith.mulf %188, %45 : vector<32x128xf32>
    %190 = arith.addf %185, %189 : vector<32x128xf32>
    %c0_98 = arith.constant 0 : index
    %c0_99 = arith.constant 0 : index
    %191 = vector.load %arg10[%c0_98, %c0_99] : memref<32x128xf32, #tpu.memory_space<vmem>>, vector<32x128xf32>
    tpu.vector_store %arg10[%c0_98, %c0_99], %190 {strides = array<i32>} : memref<32x128xf32, #tpu.memory_space<vmem>>, vector<32x128xf32>,
    %c0_100 = arith.constant 0 : index
    %c0_101 = arith.constant 0 : index
    %192 = vector.load %arg11[%c0_100, %c0_101] : memref<32x128xf32, #tpu.memory_space<vmem>>, vector<32x128xf32>
    %193 = arith.addf %192, %45 : vector<32x128xf32>
    %c0_102 = arith.constant 0 : index
    %c0_103 = arith.constant 0 : index
    %194 = vector.load %arg11[%c0_102, %c0_103] : memref<32x128xf32, #tpu.memory_space<vmem>>, vector<32x128xf32>
    tpu.vector_store %arg11[%c0_102, %c0_103], %193 {strides = array<i32>} : memref<32x128xf32, #tpu.memory_space<vmem>>, vector<32x128xf32>,
    %c1_i32_104 = arith.constant 1 : i32
    %195 = arith.cmpi eq, %arg1, %c1_i32_104 : i32
    %c0_i32_105 = arith.constant 0 : i32
    %196 = arith.cmpi eq, %arg2, %c0_i32_105 : i32
    %197 = arith.andi %195, %196 : i1
    %198 = arith.extui %197 : i1 to i32
    %c0_i32_106 = arith.constant 0 : i32
    %199 = arith.cmpi ne, %198, %c0_i32_106 : i32
    scf.if %199 {
      %c0_107 = arith.constant 0 : index
      %c0_108 = arith.constant 0 : index
      %c0_109 = arith.constant 0 : index
      %200 = vector.load %arg7[%c0_107, %c0_108, %c0_109] : memref<4x32x128xf32, #tpu.memory_space<vmem>>, vector<4x32x128xf32>
      %cst_110 = arith.constant dense<0.000000e+00> : vector<4x128xf32>
      %201 = vector.multi_reduction <add>, %200, %cst_110 [1] : vector<4x32x128xf32> to vector<4x128xf32>
      %cst_111 = arith.constant dense<0.000000e+00> : vector<4xf32>
      %202 = vector.multi_reduction <add>, %201, %cst_111 [1] : vector<4x128xf32> to vector<4xf32>
      %203 = vector.shape_cast %202 : vector<4xf32> to vector<4x1xf32>
      %c0_112 = arith.constant 0 : index
      %c0_113 = arith.constant 0 : index
      %c0_114 = arith.constant 0 : index
      %204 = vector.load %arg8[%c0_112, %c0_113, %c0_114] : memref<4x32x128xf32, #tpu.memory_space<vmem>>, vector<4x32x128xf32>
      %cst_115 = arith.constant dense<0.000000e+00> : vector<4x128xf32>
      %205 = vector.multi_reduction <add>, %204, %cst_115 [1] : vector<4x32x128xf32> to vector<4x128xf32>
      %cst_116 = arith.constant dense<0.000000e+00> : vector<4xf32>
      %206 = vector.multi_reduction <add>, %205, %cst_116 [1] : vector<4x128xf32> to vector<4xf32>
      %207 = vector.shape_cast %206 : vector<4xf32> to vector<4x1xf32>
      %c0_117 = arith.constant 0 : index
      %c0_118 = arith.constant 0 : index
      %c0_119 = arith.constant 0 : index
      %208 = vector.load %arg9[%c0_117, %c0_118, %c0_119] : memref<4x32x128xf32, #tpu.memory_space<vmem>>, vector<4x32x128xf32>
      %cst_120 = arith.constant dense<0.000000e+00> : vector<4x128xf32>
      %209 = vector.multi_reduction <add>, %208, %cst_120 [1] : vector<4x32x128xf32> to vector<4x128xf32>
      %cst_121 = arith.constant dense<0.000000e+00> : vector<4xf32>
      %210 = vector.multi_reduction <add>, %209, %cst_121 [1] : vector<4x128xf32> to vector<4xf32>
      %211 = vector.shape_cast %210 : vector<4xf32> to vector<4x1xf32>
      %c0_122 = arith.constant 0 : index
      %c0_123 = arith.constant 0 : index
      %c0_124 = arith.constant 0 : index
      %212 = vector.load %arg5[%c0_122, %c0_123, %c0_124] : memref<1x4x3xf32, #tpu.memory_space<vmem>>, vector<1x4x1xf32>
      %213 = vector.shape_cast %212 : vector<1x4x1xf32> to vector<4x1xf32>
      %214 = vector.shape_cast %203 : vector<4x1xf32> to vector<1x4x1xf32>
      tpu.vector_store %arg5[%c0_122, %c0_123, %c0_124], %214 {strides = array<i32>} : memref<1x4x3xf32, #tpu.memory_space<vmem>>, vector<1x4x1xf32>,
      %215 = arith.subf %207, %203 : vector<4x1xf32>
      %c0_125 = arith.constant 0 : index
      %c0_126 = arith.constant 0 : index
      %c1_127 = arith.constant 1 : index
      %216 = vector.load %arg5[%c0_125, %c0_126, %c1_127] : memref<1x4x3xf32, #tpu.memory_space<vmem>>, vector<1x4x1xf32>
      %217 = vector.shape_cast %216 : vector<1x4x1xf32> to vector<4x1xf32>
      %218 = vector.shape_cast %215 : vector<4x1xf32> to vector<1x4x1xf32>
      tpu.vector_store %arg5[%c0_125, %c0_126, %c1_127], %218 {strides = array<i32>} : memref<1x4x3xf32, #tpu.memory_space<vmem>>, vector<1x4x1xf32>,
      %219 = arith.subf %211, %203 : vector<4x1xf32>
      %c0_128 = arith.constant 0 : index
      %c0_129 = arith.constant 0 : index
      %c2_130 = arith.constant 2 : index
      %220 = vector.load %arg5[%c0_128, %c0_129, %c2_130] : memref<1x4x3xf32, #tpu.memory_space<vmem>>, vector<1x4x1xf32>
      %221 = vector.shape_cast %220 : vector<1x4x1xf32> to vector<4x1xf32>
      %222 = vector.shape_cast %219 : vector<4x1xf32> to vector<1x4x1xf32>
      tpu.vector_store %arg5[%c0_128, %c0_129, %c2_130], %222 {strides = array<i32>} : memref<1x4x3xf32, #tpu.memory_space<vmem>>, vector<1x4x1xf32>,
      %c0_131 = arith.constant 0 : index
      %c0_132 = arith.constant 0 : index
      %223 = vector.load %arg10[%c0_131, %c0_132] : memref<32x128xf32, #tpu.memory_space<vmem>>, vector<32x128xf32>
      %cst_133 = arith.constant dense<0.000000e+00> : vector<128xf32>
      %224 = vector.multi_reduction <add>, %223, %cst_133 [0] : vector<32x128xf32> to vector<128xf32>
      %225 = vector.shape_cast %224 : vector<128xf32> to vector<1x128xf32>
      %cst_134 = arith.constant dense<0.000000e+00> : vector<1xf32>
      %226 = vector.multi_reduction <add>, %225, %cst_134 [1] : vector<1x128xf32> to vector<1xf32>
      %227 = vector.shape_cast %226 : vector<1xf32> to vector<1x1xf32>
      %c0_135 = arith.constant 0 : index
      %c0_136 = arith.constant 0 : index
      %c0_137 = arith.constant 0 : index
      %228 = vector.load %arg6[%c0_135, %c0_136, %c0_137] : memref<1x1x2xf32, #tpu.memory_space<vmem>>, vector<1x1x1xf32>
      %229 = vector.shape_cast %228 : vector<1x1x1xf32> to vector<1x1xf32>
      %230 = vector.shape_cast %227 : vector<1x1xf32> to vector<1x1x1xf32>
      tpu.vector_store %arg6[%c0_135, %c0_136, %c0_137], %230 {strides = array<i32>} : memref<1x1x2xf32, #tpu.memory_space<vmem>>, vector<1x1x1xf32>,
      %c0_138 = arith.constant 0 : index
      %c0_139 = arith.constant 0 : index
      %231 = vector.load %arg11[%c0_138, %c0_139] : memref<32x128xf32, #tpu.memory_space<vmem>>, vector<32x128xf32>
      %cst_140 = arith.constant dense<0.000000e+00> : vector<128xf32>
      %232 = vector.multi_reduction <add>, %231, %cst_140 [0] : vector<32x128xf32> to vector<128xf32>
      %233 = vector.shape_cast %232 : vector<128xf32> to vector<1x128xf32>
      %cst_141 = arith.constant dense<0.000000e+00> : vector<1xf32>
      %234 = vector.multi_reduction <add>, %233, %cst_141 [1] : vector<1x128xf32> to vector<1xf32>
      %235 = vector.shape_cast %234 : vector<1xf32> to vector<1x1xf32>
      %c0_142 = arith.constant 0 : index
      %c0_143 = arith.constant 0 : index
      %c1_144 = arith.constant 1 : index
      %236 = vector.load %arg6[%c0_142, %c0_143, %c1_144] : memref<1x1x2xf32, #tpu.memory_space<vmem>>, vector<1x1x1xf32>
      %237 = vector.shape_cast %236 : vector<1x1x1xf32> to vector<1x1xf32>
      %238 = vector.shape_cast %235 : vector<1x1xf32> to vector<1x1x1xf32>
      tpu.vector_store %arg6[%c0_142, %c0_143, %c1_144], %238 {strides = array<i32>} : memref<1x1x2xf32, #tpu.memory_space<vmem>>, vector<1x1x1xf32>,
    } else {
    }
    return
  }
  func.func @transform_0(%arg0: i32, %arg1: i32, %arg2: i32) -> (i32, i32, i32, i32) {
    %c1_i32 = arith.constant 1 : i32
    %0 = arith.muli %arg0, %c1_i32 : i32
    %1 = arith.addi %0, %arg2 : i32
    %c0_i32 = arith.constant 0 : i32
    %c0_i32_0 = arith.constant 0 : i32
    %c0_i32_1 = arith.constant 0 : i32
    return %arg1, %c0_i32, %1, %c0_i32_0 : i32, i32, i32, i32
  }
  func.func @transform_1(%arg0: i32, %arg1: i32, %arg2: i32) -> (i32, i32, i32, i32) {
    %c1_i32 = arith.constant 1 : i32
    %0 = arith.muli %arg0, %c1_i32 : i32
    %1 = arith.addi %0, %arg2 : i32
    %c0_i32 = arith.constant 0 : i32
    %c0_i32_0 = arith.constant 0 : i32
    %c0_i32_1 = arith.constant 0 : i32
    return %arg1, %c0_i32, %1, %c0_i32_0 : i32, i32, i32, i32
  }
  func.func @transform_2(%arg0: i32, %arg1: i32, %arg2: i32) -> (i32, i32, i32) {
    %c0_i32 = arith.constant 0 : i32
    %c0_i32_0 = arith.constant 0 : i32
    %c0_i32_1 = arith.constant 0 : i32
    return %arg0, %c0_i32, %c0_i32_0 : i32, i32, i32
  }
  func.func @transform_3(%arg0: i32, %arg1: i32, %arg2: i32) -> (i32, i32, i32) {
    %c0_i32 = arith.constant 0 : i32
    %c0_i32_0 = arith.constant 0 : i32
    %c0_i32_1 = arith.constant 0 : i32
    return %arg0, %c0_i32, %c0_i32_0 : i32, i32, i32
  }
}

</mosaic_0001>

<bundles_post_ra>
// kernel: tpu_custom_call.1
= control target key start
LH: loop header
LB: loop body
LE: loop exit
PB: predicated region body
PF: predicated region fallthrough
CT: control target
= control target key end

     0   :  { %9 = vsyncpa [#allocation8], 0  ;;  %s2139_s0 = inlined_call_operand.hbm [shape: f32[2,4,32,128], index: 0, kind: input, shape index: {}]   ;;  %s2140_s1 = inlined_call_operand.hbm [shape: u8[2,1,32,128], index: 1, kind: input, shape index: {}]   ;;  %s2141_s2 = inlined_call_operand.vmem [shape: f32[1,4,3], index: 2, kind: output, shape index: {0}]   ;;  %s2142_s3 = inlined_call_operand.hbm [shape: f32[1,1,2], index: 3, kind: output, shape index: {1}]  }
   0x1   :  { %11 = vsyncpa [#allocation8 + $0x1], 0 }
   0x2   :  { %12 = vsyncpa [#allocation11], 0 }
   0x3   :  { %14 = vsyncpa [#allocation11 + $0x1], 0 }
   0x4   :  { %15 = vsyncpa [#allocation9], 0  ;;  %s1504_s12 = smov 0   ;;  %s1506_s13 = smov 0  }
   0x5   :  { %s1508_s14 = smov 0   ;;  %s1510_s15 = smov 0  }
   0x6   :  { %s1512_s16 = smov 0   ;;  %s1514_s17 = smov 0  }
   0x7 LB: > { %s1197_s18 = sadd.s32 4294967295, %s1475_s17   ;;  %s36_s19 = sadd.s32 1, %s1471_s16  ;;  %s1475_s17 = sphi %s1514_s17, %s21_s17   ;;  %s1471_s16 = sphi %s1512_s16, %s2182_s16   ;;  %s1467_s15 = sphi %s1510_s15, %s2181_s15   ;;  %s1463_s14 = sphi %s1508_s14, %s2180_s14   ;;  %s1459_s13 = sphi %s1506_s13, %s2179_s13   ;;  %s1455_s12 = sphi %s1504_s12, %s2178_s12  }
   0x8   : > { %p38_p0 = scmp.ge.s32.totalorder %s36_s19, 2  ;;  %s51_s20 = sadd.s32 1, %s1463_s14 }
   0x9   : > { %p58_p1 = scmp.ne.s32.totalorder %s1463_s14, %s1459_s13  ;;  %p59_p2 = scmp.eq.s32.totalorder %s1475_s17, 0 }
   0xa   : > { %s2184_s19 = smov (%p38_p0, %s36_s19), 0  ;;  %p64_p4 = scmp.ne.s32.totalorder %s1459_s13, %s1455_s12 }
   0xb   : > { %p1540_p3 = por %p59_p2, %p58_p1  ;;  %s46_s22 = ssub.s32 %s1471_s16, %s2184_s19 }
   0xc   : > { %p65_p5 = scmp.eq.s32.totalorder %s1197_s18, 0  ;;  %p49_p6 = scmp.eq.s32.totalorder %s46_s22, 0 }
   0xd   : > { %p1233_p8 = scmp.lt.s32.totalorder %s1475_s17, 2  ;;  %s1558_s25 = sand.u32 1, %s1463_s14  }
   0xe   : > { %p1549_p7 = por %p65_p5, %p64_p4  ;;  %s1215_s26 = sshll.u32 %s1471_s16, 11 }
   0xf   : > { %s1555_s24 = scalar_select %p49_p6, %s1463_s14, %s51_s20  }
  0x10   : > { %s1200_s27 = sshll.u32 %s1558_s25, 7  ;;  %s183_s30 = scalar_lea.hbm %s2139_s0, %s1215_s26 }
  0x11   : > { %s174_s4 = scalar_lea.vmem [#allocation7], %s1200_s27  ;;  %p1567_p9 = pnand %p1233_p8, %p1540_p3 }
  0x12   : > { %s184_s5 = sshll.u32 %s174_s4, 4  ;;  %s171_s7 = scalar_lea.sflag [#allocation8], %s1558_s25  ;;  %s185_s5 = int_to_ptr.vmem [resolvable:$true] %s184_s5 }
  0x13   : > { %p1339_p10 = pneg %p1567_p9  ;;  %s1350_s8 = scalar_lea.vmem %s185_s5, 2048 }
  0x14   : > { %p1351_p11 = scmp.ne.s32.totalorder %s185_s5, %s1350_s8  ;;  %s1477_s9 = smov [#allocation7]  }
  0x15   : > { %s1355_s10 = sshll.u32 %s1477_s9, 4  ;;  %s1356_s10 = int_to_ptr.vmem [resolvable:$false] %s1355_s10 }
  0x16   : > { %p1353_p12 = pnand %p1351_p11, %p1339_p10  ;;  %s1357_s11 = scalar_lea.vmem %s1356_s10, 4096 }
  0x17   : > { %p1358_p0 = scmp.lt.s32.totalorder %s185_s5, %s1356_s10  ;;  %p1359_p1 = scmp.lt.s32.totalorder %s1357_s11, %s1350_s8 }
  0x18   : > { %p1354_p13 = pneg %p1353_p12 }
  0x19   : > { %p1360_p2 = por %p1359_p1, %p1358_p0 }
  0x1b   : > { %p1361_p3 = pnand %p1360_p2, %p1354_p13 }
  0x1d   : > { %1364 = shalt.err (!%p1361_p3)
}
  0x1e   : > { %s1478_s12 = smov 128   ;;  %s1479_s20 = smov 8  }
  0x1f   : > { %1229 = dma.hbm_to_vmem [thread:$0]  (!%p1567_p9), %s183_s30, 2048, %s185_s5, %s171_s7, %s1478_s12, %s1478_s12, %s1479_s20  }
  0x20   : > { %p1205_p4 = scmp.ge.s32.totalorder %s1475_s17, 1  ;;  %p212_p5 = scmp.lt.s32.totalorder %s1475_s17, 3 }
  0x21   : > { %s1203_s21 = sshll.u32 %s1558_s25, 3  ;;  %s1204_s26 = sshll.u32 %s1471_s16, 7 }
  0x22   : > { %p1582_p6 = pnand %p1205_p4, %p212_p5  ;;  %s198_s27 = scalar_lea.vmem [#allocation10], %s1203_s21 }
  0x23   : > { %s207_s28 = sshll.u32 %s198_s27, 4  ;;  %s205_s8 = scalar_lea.hbm %s2140_s1, %s1204_s26  ;;  %s208_s28 = int_to_ptr.vmem [resolvable:$true] %s207_s28 }
  0x24   : > { %s195_s9 = scalar_lea.sflag [#allocation11], %s1558_s25  ;;  %s1378_s10 = scalar_lea.vmem %s208_s28, 128 }
  0x25   : > { %p1379_p8 = scmp.ne.s32.totalorder %s208_s28, %s1378_s10  ;;  %s1480_s30 = smov [#allocation10]  }
  0x26   : > { %s1383_s5 = sshll.u32 %s1480_s30, 4  ;;  %s1384_s5 = int_to_ptr.vmem [resolvable:$false] %s1383_s5 }
  0x27   : > { %p1381_p11 = pnand %p1379_p8, %p1339_p10  ;;  %s1385_s7 = scalar_lea.vmem %s1384_s5, 256 }
  0x28   : > { %p1386_p13 = scmp.lt.s32.totalorder %s208_s28, %s1384_s5  ;;  %p1387_p0 = scmp.lt.s32.totalorder %s1385_s7, %s1378_s10 }
  0x29   : > { %p1382_p12 = pneg %p1381_p11 }
  0x2a   : > { %p1388_p1 = por %p1387_p0, %p1386_p13 }
  0x2c   : > { %p1389_p2 = pnand %p1388_p1, %p1382_p12 }
  0x2e   : > { %1392 = shalt.err (!%p1389_p2)
}
  0x2f   : > { %1232 = dma.hbm_to_vmem [thread:$0]  (!%p1567_p9), %s205_s8, 128, %s208_s28, %s195_s9  }
  0x30   : > { %216 = sbr.rel (%p1582_p6) target bundleno = 386 (0x182), region = 28 }
  0x35   : > { %s218_s25 = sand.u32 1, %s1459_s13  }
  0x36   : > { %s1206_s11 = sshll.u32 %s218_s25, 7  ;;  %s219_s12 = scalar_lea.sflag [#allocation8], %s218_s25 }
  0x37   : > { %s1599_s20 = scalar_lea.vmem [#allocation7], %s1206_s11 }
  0x38   : > { %1442 = dma.done.wait (%p1549_p7), %s219_s12, 2048  }
  0x39   : > { %1444 = vsyncadd (%p1549_p7), %s219_s12, 4294965248  ;;  %s1207_s21 = sshll.u32 %s218_s25, 3  ;;  %s228_s26 = scalar_lea.sflag [#allocation11], %s218_s25 }
  0x3a   : > { %s1605_s6 = scalar_lea.vmem [#allocation10], %s1207_s21 }
  0x3b   : > { %1446 = dma.done.wait (%p1549_p7), %s228_s26, 128  }
  0x3c   : > { %1448 = vsyncadd (%p1549_p7), %s228_s26, 4294967168  ;;  %p265_p9 = scmp.eq.s32.totalorder %s1467_s15, 0 }
  0x3d   : > { %v1481_v0 = vmov (%p265_p9), 0.0  }
  0x3e   : > { %270 = sbr.rel (!%p265_p9) target bundleno = 90 (0x5a), region = 40  ;;  %271 = vst [vmem:[#allocation2 + $0x30] sm:$0xff] (%p265_p9), %v1481_v0  ;;  %272 = vst [vmem:[#allocation2] sm:$0xff] (%p265_p9), %v1481_v0 }
  0x3f   : > { %273 = vst [vmem:[#allocation2 + $0x58] sm:$0xff] (%p265_p9), %v1481_v0  ;;  %274 = vst [vmem:[#allocation2 + $0x18] sm:$0xff] (%p265_p9), %v1481_v0 }
  0x40   : > { %275 = vst [vmem:[#allocation2 + $0x50] sm:$0xff] (%p265_p9), %v1481_v0  ;;  %276 = vst [vmem:[#allocation2 + $0x68] sm:$0xff] (%p265_p9), %v1481_v0 }
  0x41   : > { %277 = vst [vmem:[#allocation2 + $0x8] sm:$0xff] (%p265_p9), %v1481_v0  ;;  %278 = vst [vmem:[#allocation2 + $0x48] sm:$0xff] (%p265_p9), %v1481_v0 }
  0x42   : > { %279 = vst [vmem:[#allocation2 + $0x40] sm:$0xff] (%p265_p9), %v1481_v0  ;;  %280 = vst [vmem:[#allocation2 + $0x20] sm:$0xff] (%p265_p9), %v1481_v0 }
  0x43   : > { %281 = vst [vmem:[#allocation2 + $0x10] sm:$0xff] %v1481_v0  ;;  %282 = vst [vmem:[#allocation2 + $0x38] sm:$0xff] %v1481_v0 }
  0x44   : > { %283 = vst [vmem:[#allocation2 + $0x60] sm:$0xff] %v1481_v0  ;;  %284 = vst [vmem:[#allocation2 + $0x70] sm:$0xff] %v1481_v0 }
  0x45   : > { %285 = vst [vmem:[#allocation2 + $0x78] sm:$0xff] %v1481_v0  ;;  %286 = vst [vmem:[#allocation2 + $0x28] sm:$0xff] %v1481_v0 }
  0x46   : > { %287 = vst [vmem:[#allocation3 + $0x28] sm:$0xff] %v1481_v0  ;;  %288 = vst [vmem:[#allocation3 + $0x68] sm:$0xff] %v1481_v0 }
  0x47   : > { %289 = vst [vmem:[#allocation3 + $0x10] sm:$0xff] %v1481_v0  ;;  %290 = vst [vmem:[#allocation3 + $0x40] sm:$0xff] %v1481_v0 }
  0x48   : > { %291 = vst [vmem:[#allocation3 + $0x48] sm:$0xff] %v1481_v0  ;;  %292 = vst [vmem:[#allocation3 + $0x30] sm:$0xff] %v1481_v0 }
  0x49   : > { %293 = vst [vmem:[#allocation3 + $0x70] sm:$0xff] %v1481_v0  ;;  %294 = vst [vmem:[#allocation3 + $0x38] sm:$0xff] %v1481_v0 }
  0x4a   : > { %295 = vst [vmem:[#allocation3 + $0x20] sm:$0xff] %v1481_v0  ;;  %296 = vst [vmem:[#allocation3 + $0x78] sm:$0xff] %v1481_v0 }
  0x4b   : > { %297 = vst [vmem:[#allocation3 + $0x18] sm:$0xff] %v1481_v0  ;;  %298 = vst [vmem:[#allocation3 + $0x58] sm:$0xff] %v1481_v0 }
  0x4c   : > { %299 = vst [vmem:[#allocation3] sm:$0xff] %v1481_v0  ;;  %300 = vst [vmem:[#allocation3 + $0x8] sm:$0xff] %v1481_v0 }
  0x4d   : > { %301 = vst [vmem:[#allocation3 + $0x60] sm:$0xff] %v1481_v0  ;;  %302 = vst [vmem:[#allocation3 + $0x50] sm:$0xff] %v1481_v0 }
  0x4e   : > { %303 = vst [vmem:[#allocation4 + $0x8] sm:$0xff] %v1481_v0  ;;  %304 = vst [vmem:[#allocation4] sm:$0xff] %v1481_v0 }
  0x4f   : > { %305 = vst [vmem:[#allocation4 + $0x48] sm:$0xff] %v1481_v0  ;;  %306 = vst [vmem:[#allocation4 + $0x60] sm:$0xff] %v1481_v0 }
  0x50   : > { %307 = vst [vmem:[#allocation4 + $0x68] sm:$0xff] %v1481_v0  ;;  %308 = vst [vmem:[#allocation4 + $0x18] sm:$0xff] %v1481_v0 }
  0x51   : > { %309 = vst [vmem:[#allocation4 + $0x10] sm:$0xff] %v1481_v0  ;;  %310 = vst [vmem:[#allocation4 + $0x38] sm:$0xff] %v1481_v0 }
  0x52   : > { %311 = vst [vmem:[#allocation4 + $0x40] sm:$0xff] %v1481_v0  ;;  %312 = vst [vmem:[#allocation4 + $0x28] sm:$0xff] %v1481_v0 }
  0x53   : > { %313 = vst [vmem:[#allocation4 + $0x70] sm:$0xff] %v1481_v0  ;;  %314 = vst [vmem:[#allocation4 + $0x20] sm:$0xff] %v1481_v0 }
  0x54   : > { %315 = vst [vmem:[#allocation4 + $0x58] sm:$0xff] %v1481_v0  ;;  %316 = vst [vmem:[#allocation4 + $0x30] sm:$0xff] %v1481_v0 }
  0x55   : > { %317 = vst [vmem:[#allocation4 + $0x50] sm:$0xff] %v1481_v0  ;;  %318 = vst [vmem:[#allocation4 + $0x78] sm:$0xff] %v1481_v0 }
  0x56   : > { %319 = vst [vmem:[#allocation5 + $0x18] sm:$0xff] %v1481_v0  ;;  %320 = vst [vmem:[#allocation5] sm:$0xff] %v1481_v0 }
  0x57   : > { %321 = vst [vmem:[#allocation5 + $0x8] sm:$0xff] %v1481_v0  ;;  %322 = vst [vmem:[#allocation5 + $0x10] sm:$0xff] %v1481_v0 }
  0x58   : > { %323 = vst [vmem:[#allocation6 + $0x8] sm:$0xff] %v1481_v0  ;;  %324 = vst [vmem:[#allocation6 + $0x18] sm:$0xff] %v1481_v0 }
  0x59   : > { %325 = vst [vmem:[#allocation6] sm:$0xff] %v1481_v0  ;;  %326 = vst [vmem:[#allocation6 + $0x10] sm:$0xff] %v1481_v0 }
  0x5a PF: > { %v327_v1 = vld [vmem:[%s1599_s20] sm:$0xff]  ;;  %v354_v4 = vlaneseq  ;;  %p827_p7 = scmp.eq.s32.totalorder %s1467_s15, 1  ;;  %v1633_v11 = vld [vmem:[%s1599_s20 + $0x8] sm:$0xff]  ;;  %v1482_v37 = vmov 0.0   ;;  %v329_v52 = vld [vmem:[%s1599_s20 + $0x10] sm:$0xff] }
  0x5b   : > { %v1614_v2 = vld [vmem:[%s1599_s20 + $0x20] sm:$0xff]  ;;  %v1636_v12 = vld [vmem:[%s1599_s20 + $0x28] sm:$0xff]  ;;  %v1703_v53 = vld [vmem:[%s1599_s20 + $0x30] sm:$0xff] }
  0x5c   : > { %v1617_v3 = vld [vmem:[%s1599_s20 + $0x40] sm:$0xff]  ;;  %v382_v7 = vmax.f32 %v327_v1, %v1614_v2  ;;  %v1628_v9 = vshrl.u32 %v354_v4, 7  ;;  %v1630_v10 = vand.u32 127, %v354_v4  ;;  %v1639_v13 = vld [vmem:[%s1599_s20 + $0x48] sm:$0xff]  ;;  %v385_v16 = vmax.f32 %v1633_v11, %v1636_v12  ;;  %v1709_v58 = vld [vmem:[%s1599_s20 + $0x50] sm:$0xff] }
  0x5d   : > { %v1621_v5 = vld [vmem:[%s1599_s20 + $0x60] sm:$0xff]  ;;  %v1657_v24 = vld [vmem:[%s1599_s20 + $0x68] sm:$0xff]  ;;  %v388_v61 = vmax.f32 %v329_v52, %v1703_v53  ;;  %v1717_v62 = vld [vmem:[%s1599_s20 + $0x70] sm:$0xff] }
  0x5e   : > { %v1624_v6 = vld [vmem:[%s1605_s6] sm:$0xff]  ;;  %v383_v15 = vmax.f32 %v382_v7, %v1617_v3  ;;  %v361_v20 = vmul.u32 128, %v1628_v9  ;;  %v356_v22 = vadd.s32 8, %v1628_v9  ;;  %v386_v25 = vmax.f32 %v385_v16, %v1639_v13  ;;  %v1726_v7 = vld [vmem:[%s1599_s20 + $0x18] sm:$0xff] }
  0x5f   : > { %v344_v8 = vunpack.c.0.s8 %v1624_v6  ;;  %v345_v14 = vunpack.c.1.s8 %v1624_v6  ;;  %v346_v17 = vunpack.c.2.s8 %v1624_v6  ;;  %v347_v18 = vunpack.c.3.s8 %v1624_v6 }
  0x60   : > { %v1654_v23 = vmax.f32 %v383_v15, %v1621_v5  ;;  %v357_v27 = vadd.s32 16, %v1628_v9  ;;  %v370_v28 = vadd.s32 %v361_v20, %v1630_v10  ;;  %v362_v29 = vmul.u32 128, %v356_v22 }
  0x61   : > { %v1647_v19 = vand.u32 255, %v344_v8  ;;  %v1650_v21 = vand.u32 255, %v345_v14  ;;  %v1660_v26 = vand.u32 255, %v346_v17  ;;  %v1676_v36 = vmax.f32 %v386_v25, %v1657_v24  ;;  %v1729_v8 = vld [vmem:[%s1599_s20 + $0x38] sm:$0xff]  ;;  %v550_v14 = vld [vmem:[#allocation4 + $0x8] sm:$0xff] }
  0x62   : > { %2156 = vst [vmem:[#allocation17_spill] sm:$0xff] %v1654_v23  ;;  %v394_v30 = vsub.f32 %v327_v1, %v1654_v23  ;;  %v398_v31 = vsub.f32 %v1614_v2, %v1654_v23  ;;  %v402_v32 = vsub.f32 %v1617_v3, %v1654_v23  ;;  %v406_v33 = vsub.f32 %v1621_v5, %v1654_v23  ;;  %v1749_v25 = vld [vmem:[%s1599_s20 + $0x58] sm:$0xff] }
  0x63   : > { %2155 = vst [vmem:[#allocation16_spill] sm:$0xff] %v1650_v21  ;;  %2157 = vst [vmem:[#allocation18_spill] sm:$0xff] %v1660_v26  ;;  %vm490_vm0 = vcmp.gt.s32.totalorder %v1647_v19, 0  ;;  %vm492_vm1 = vcmp.gt.s32.totalorder %v1650_v21, 0  ;;  %vm374_vm2 = vcmp.lt.s32.totalorder %v370_v28, 256  ;;  %v371_v35 = vadd.s32 %v362_v29, %v1630_v10  ;;  %v551_v28 = vld [vmem:[#allocation4] sm:$0xff] }
  0x64   : > { %v491_v34 = vsel %vm490_vm0, %v1647_v19, 0  ;;  %2158 = vst [vmem:[#allocation19_spill] sm:$0xff] %v1676_v36  ;;  %v1679_v38 = vsel %vm374_vm2, 1.0, %v1482_v37  ;;  %v410_v39 = vmul.f32 1.442695, %v394_v30  ;;  %v395_v45 = vsub.f32 %v1633_v11, %v1676_v36 }
  0x65   : > { %v418_v40 = vmul.f32 1.442695, %v398_v31  ;;  %vm498_vm3 = vcmp.lt.s32.totalorder %v491_v34, 3  ;;  %v426_v41 = vmul.f32 1.442695, %v402_v32  ;;  %vm375_vm4 = vcmp.lt.s32.totalorder %v371_v35, 256 }
  0x66   : > { %v434_v42 = vmul.f32 1.442695, %v406_v33  ;;  %v1681_v43 = vsel %vm498_vm3, %v491_v34, 3  ;;  %1289 = vpow2.f32 %v410_v39  ;;  %v1685_v44 = vsel %vm375_vm4, 1.0, %v1482_v37  ;;  %v1767_v32 = vld [vmem:[%s1599_s20 + $0x78] sm:$0xff] }
  0x67   : > { %vm514_vm5 = vcmp.eq.s32.totalorder %v1681_v43, 0  ;;  %1291 = vpow2.f32 %v418_v40  ;;  %v399_v47 = vsub.f32 %v1636_v12, %v1676_v36  ;;  %v403_v48 = vsub.f32 %v1639_v13, %v1676_v36  ;;  %v552_v40 = vld [vmem:[#allocation4 + $0x48] sm:$0xff] }
  0x68   : > { %v1690_v46 = vsel %vm514_vm5, %v1679_v38, 0.0  ;;  %1293 = vpow2.f32 %v426_v41  ;;  %v407_v50 = vsub.f32 %v1657_v24, %v1676_v36  ;;  %v412_v51 = vmul.f32 1.442695, %v395_v45 }
  0x69   : > { %v1697_v49 = vmul.f32 %v1690_v46, %v327_v1  ;;  %1295 = vpow2.f32 %v434_v42  ;;  %v420_v54 = vmul.f32 1.442695, %v399_v47  ;;  %v428_v55 = vmul.f32 1.442695, %v403_v48 }
  0x6a   : > { %v493_v56 = vsel %vm492_vm1, %v1650_v21, 0  ;;  %1297 = vpow2.f32 %v412_v51  ;;  %v436_v57 = vmul.f32 1.442695, %v407_v50  ;;  %v363_v59 = vmul.u32 128, %v357_v27  ;;  %v696_v21 = vld [vmem:[#allocation3 + $0x20] sm:$0xff] }
  0x6b   : > { %vm500_vm6 = vcmp.lt.s32.totalorder %v493_v56, 3  ;;  %1299 = vpow2.f32 %v420_v54  ;;  %vm494_vm7 = vcmp.gt.s32.totalorder %v1660_v26, 0  ;;  %v389_v4 = vmax.f32 %v388_v61, %v1709_v58 }
  0x6c   : > { %v1711_v60 = vsel %vm500_vm6, %v493_v56, 3  ;;  %1301 = vpow2.f32 %v428_v55  ;;  %v372_v63 = vadd.s32 %v363_v59, %v1630_v10  ;;  %v495_v0 = vsel %vm494_vm7, %v1660_v26, 0 }
  0x6d   : > { %vm515_vm8 = vcmp.eq.s32.totalorder %v1711_v60, 0  ;;  %1303 = vpow2.f32 %v436_v57  ;;  %vm502_vm9 = vcmp.lt.s32.totalorder %v495_v0, 3  ;;  %v1739_v17 = vand.u32 255, %v347_v18 }
  0x6e   : > { %v1722_v1 = vsel %vm515_vm8, %v1685_v44, 0.0  ;;  %vm376_vm10 = vcmp.lt.s32.totalorder %v372_v63, 256  ;;  %v1735_v16 = vsel %vm502_vm9, %v495_v0, 3  ;;  %v1745_v22 = vmax.f32 %v389_v4, %v1717_v62 }
  0x6f   : > { %v1733_v15 = vmul.f32 %v1722_v1, %v1633_v11  ;;  %2159 = vst [vmem:[#allocation20_spill] sm:$0xff] %v1739_v17  ;;  %v1742_v20 = vsel %vm376_vm10, 1.0, %v1482_v37  ;;  %vm516_vm11 = vcmp.eq.s32.totalorder %v1735_v16, 0  ;;  %v358_v11 = vadd.s32 24, %v1628_v9 }
  0x70   : > { %2160 = vst [vmem:[#allocation21_spill] sm:$0xff] %v1745_v22  ;;  %v1753_v27 = vsel %vm516_vm11, %v1742_v20, 0.0  ;;  %v391_v6 = vmax.f32 %v1726_v7, %v1729_v8  ;;  %vm496_vm12 = vcmp.gt.s32.totalorder %v1739_v17, 0  ;;  %v554_v18 = vadd.f32 %v550_v14, %v1690_v46 }
  0x71   : > { %v396_v29 = vsub.f32 %v329_v52, %v1745_v22  ;;  %v400_v30 = vsub.f32 %v1703_v53, %v1745_v22  ;;  %v404_v31 = vsub.f32 %v1709_v58, %v1745_v22  ;;  %v408_v9 = vsub.f32 %v1717_v62, %v1745_v22 }
  0x72   : > { %v1770_v33 = vmul.f32 %v1753_v27, %v329_v52  ;;  %v364_v34 = vmul.u32 128, %v358_v11  ;;  %v392_v35 = vmax.f32 %v391_v6, %v1749_v25  ;;  %v497_v39 = vsel %vm496_vm12, %v1739_v17, 0  ;;  %558 = vst [vmem:[#allocation4 + $0x8] sm:$0xff] %v554_v18 }
  0x73   : > { %v1774_v41 = vpop.eup %1289  ;;  %v414_v42 = vmul.f32 1.442695, %v396_v29  ;;  %v422_v45 = vmul.f32 1.442695, %v400_v30  ;;  %v430_v47 = vmul.f32 1.442695, %v404_v31  ;;  %v555_v48 = vadd.f32 %v551_v28, %v1722_v1 }
  0x74   : > { %v1777_v50 = vpop.eup %1291  ;;  %v438_v51 = vmul.f32 1.442695, %v408_v9  ;;  %v373_v52 = vadd.s32 %v364_v34, %v1630_v10  ;;  %v1781_v54 = vmax.f32 %v392_v35, %v1767_v32  ;;  %vm504_vm13 = vcmp.lt.s32.totalorder %v497_v39, 3  ;;  %v553_v30 = vld [vmem:[#allocation4 + $0x60] sm:$0xff] }
  0x75   : > { %v1783_v55 = vpop.eup %1293  ;;  %v442_v56 = vadd.f32 %v1777_v50, %v1774_v41  ;;  %1305 = vpow2.f32 %v414_v42  ;;  %v1787_v57 = vsel %vm504_vm13, %v497_v39, 3  ;;  %559 = vst [vmem:[#allocation4] sm:$0xff] %v555_v48  ;;  %v556_v59 = vadd.f32 %v552_v40, %v1753_v27 }
  0x76   : > { %2161 = vst [vmem:[#allocation22_spill] sm:$0xff] %v1781_v54  ;;  %v1790_v61 = vpop.eup %1295  ;;  %1307 = vpow2.f32 %v422_v45  ;;  %vm377_vm14 = vcmp.lt.s32.totalorder %v373_v52, 256  ;;  %v397_v10 = vsub.f32 %v1726_v7, %v1781_v54  ;;  %v401_v63 = vsub.f32 %v1729_v8, %v1781_v54 }
  0x77   : > { %v1796_v0 = vpop.eup %1297  ;;  %v443_v4 = vadd.f32 %v1783_v55, %v442_v56  ;;  %1309 = vpow2.f32 %v430_v47  ;;  %v1800_v14 = vsel %vm377_vm14, 1.0, %v1482_v37  ;;  %v405_v11 = vsub.f32 %v1749_v25, %v1781_v54  ;;  %560 = vst [vmem:[#allocation4 + $0x48] sm:$0xff] %v556_v59  ;;  %v616_v56 = vld [vmem:[#allocation4 + $0x68] sm:$0xff]  ;;  %v617_v59 = vld [vmem:[#allocation4 + $0x18] sm:$0xff] }
  0x78   : > { %v1804_v6 = vpop.eup %1299  ;;  %1311 = vpow2.f32 %v438_v51  ;;  %v409_v18 = vsub.f32 %v1767_v32, %v1781_v54  ;;  %v416_v28 = vmul.f32 1.442695, %v397_v10  ;;  %v424_v29 = vmul.f32 1.442695, %v401_v63 }
  0x79   : > { %v1808_v31 = vpop.eup %1301  ;;  %v1811_v9 = vadd.f32 %v1790_v61, %v443_v4  ;;  %v445_v37 = vadd.f32 %v1804_v6, %v1796_v0  ;;  %v432_v34 = vmul.f32 1.442695, %v405_v11  ;;  %vm517_vm15 = vcmp.eq.s32.totalorder %v1787_v57, 0  ;;  %v618_v4 = vld [vmem:[#allocation4 + $0x10] sm:$0xff]  ;;  %v619_v11 = vld [vmem:[#allocation4 + $0x38] sm:$0xff] }
  0x7a   : > { %v1816_v35 = vpop.eup %1303  ;;  %1313 = vpow2.f32 %v416_v28  ;;  %v440_v39 = vmul.f32 1.442695, %v409_v18  ;;  %v1819_v40 = vsel %vm517_vm15, %v1800_v14, 0.0  ;;  %vm578_vm0 = vcmp.eq.s32.totalorder %v1681_v43, 1 }
  0x7b   : > { %1315 = vrcp.f32 %v1811_v9  ;;  %v446_v42 = vadd.f32 %v1808_v31, %v445_v37  ;;  %v533_v45 = vmul.f32 %v1819_v40, %v1726_v7  ;;  %v557_v47 = vadd.f32 %v553_v30, %v1819_v40 }
  0x7c   : > { %1317 = vpow2.f32 %v424_v29  ;;  %v1828_v48 = vsel %vm578_vm0, %v1679_v38, 0.0  ;;  %vm579_vm1 = vcmp.eq.s32.totalorder %v1711_v60, 1  ;;  %vm580_vm2 = vcmp.eq.s32.totalorder %v1735_v16, 1 }
  0x7d   : > { %v1833_v51 = vadd.f32 %v1816_v35, %v446_v42  ;;  %1319 = vpow2.f32 %v432_v34  ;;  %561 = vst [vmem:[#allocation4 + $0x60] sm:$0xff] %v557_v47  ;;  %v594_v52 = vmul.f32 %v1828_v48, %v1614_v2  ;;  %v1838_v7 = vsel %vm579_vm1, %v1685_v44, 0.0  ;;  %v684_v47 = vld [vmem:[#allocation4 + $0x28] sm:$0xff] }
  0x7e   : > { %1321 = vpow2.f32 %v440_v39  ;;  %v595_v10 = vmul.f32 %v1838_v7, %v1636_v12  ;;  %v1843_v63 = vsel %vm580_vm2, %v1742_v20, 0.0  ;;  %vm581_vm3 = vcmp.eq.s32.totalorder %v1787_v57, 1 }
  0x7f   : > { %1323 = vrcp.f32 %v1833_v51  ;;  %v598_v2 = vadd.f32 %v594_v52, %v1697_v49  ;;  %v596_v18 = vmul.f32 %v1843_v63, %v1703_v53  ;;  %v1851_v28 = vsel %vm581_vm3, %v1800_v14, 0.0 }
  0x80   : > { %v599_v29 = vadd.f32 %v595_v10, %v1733_v15  ;;  %v597_v12 = vmul.f32 %v1851_v28, %v1729_v8  ;;  %v620_v30 = vadd.f32 %v616_v56, %v1828_v48  ;;  %v621_v37 = vadd.f32 %v617_v59, %v1838_v7  ;;  %v683_v8 = vld [vmem:[#allocation4 + $0x40] sm:$0xff]  ;;  %v685_v59 = vld [vmem:[#allocation4 + $0x70] sm:$0xff] }
  0x81   : > { %v600_v34 = vadd.f32 %v596_v18, %v1770_v33  ;;  %v622_v39 = vadd.f32 %v618_v4, %v1843_v63  ;;  %v623_v49 = vadd.f32 %v619_v11, %v1851_v28  ;;  %vm645_vm4 = vcmp.eq.s32.totalorder %v1681_v43, 2 }
  0x82   : > { %v1862_v53 = vpop.eup %1305  ;;  %v601_v42 = vadd.f32 %v597_v12, %v533_v45  ;;  %624 = vst [vmem:[#allocation4 + $0x68] sm:$0xff] %v620_v30  ;;  %625 = vst [vmem:[#allocation4 + $0x18] sm:$0xff] %v621_v37  ;;  %v649_v15 = vsel %vm645_vm4, %v1679_v38, 0.0  ;;  %vm646_vm5 = vcmp.eq.s32.totalorder %v1711_v60, 2  ;;  %vm647_vm6 = vcmp.eq.s32.totalorder %v1735_v16, 2  ;;  %v686_v12 = vld [vmem:[#allocation4 + $0x20] sm:$0xff] }
  0x83   : > { %v1867_v33 = vpop.eup %1307  ;;  %626 = vst [vmem:[#allocation4 + $0x10] sm:$0xff] %v622_v39  ;;  %627 = vst [vmem:[#allocation4 + $0x38] sm:$0xff] %v623_v49  ;;  %v661_v52 = vmul.f32 %v649_v15, %v1617_v3  ;;  %v1871_v56 = vsel %vm646_vm5, %v1685_v44, 0.0  ;;  %v1874_v45 = vsel %vm647_vm6, %v1742_v20, 0.0  ;;  %vm648_vm7 = vcmp.eq.s32.totalorder %v1787_v57, 2 }
  0x84   : > { %v1877_v10 = vpop.eup %1309  ;;  %v448_v4 = vadd.f32 %v1867_v33, %v1862_v53  ;;  %v662_v11 = vmul.f32 %v1871_v56, %v1639_v13  ;;  %v663_v3 = vmul.f32 %v1874_v45, %v1709_v58  ;;  %v1886_v18 = vsel %vm648_vm7, %v1800_v14, 0.0 }
  0x85   : > { %v1888_v30 = vpop.eup %1311  ;;  %v1890_v37 = vadd.f32 %v661_v52, %v598_v2  ;;  %v664_v39 = vmul.f32 %v1886_v18, %v1749_v25  ;;  %v687_v49 = vadd.f32 %v683_v8, %v649_v15  ;;  %v688_v54 = vadd.f32 %v684_v47, %v1871_v56 }
  0x86   : > { %v449_v22 = vadd.f32 %v1877_v10, %v448_v4  ;;  %v1896_v13 = vadd.f32 %v662_v11, %v599_v29  ;;  %v1898_v36 = vadd.f32 %v663_v3, %v600_v34  ;;  %v689_v58 = vadd.f32 %v685_v59, %v1874_v45  ;;  %v562_v59 = vld [vmem:[#allocation3 + $0x28] sm:$0xff] }
  0x87   : > { %v1901_v23 = vpop.eup %1313  ;;  %v1903_v17 = vadd.f32 %v664_v39, %v601_v42  ;;  %691 = vst [vmem:[#allocation4 + $0x40] sm:$0xff] %v687_v49  ;;  %692 = vst [vmem:[#allocation4 + $0x28] sm:$0xff] %v688_v54  ;;  %v690_v2 = vadd.f32 %v686_v12, %v1886_v18  ;;  %vm712_vm8 = vcmp.eq.s32.totalorder %v1681_v43, 3  ;;  %v538_v54 = vld [vmem:[#allocation2 + $0x30] sm:$0xff]  ;;  %vm713_vm9 = vcmp.eq.s32.totalorder %v1711_v60, 3  ;;  %v629_v11 = vld [vmem:[#allocation3 + $0x48] sm:$0xff] }
  0x88   : > { %2162 = vst [vmem:[#allocation23_spill] sm:$0xff] %v1896_v13  ;;  %2163 = vst [vmem:[#allocation24_spill] sm:$0xff] %v1898_v36  ;;  %v1316_v25 = vpop.eup %1315  ;;  %v1907_v8 = vadd.f32 %v1888_v30, %v449_v22  ;;  %v1931_v12 = vsel %vm712_vm8, %v1679_v38, 0.0  ;;  %vm714_vm10 = vcmp.eq.s32.totalorder %v1735_v16, 3  ;;  %vm715_vm11 = vcmp.eq.s32.totalorder %v1787_v57, 3 }
  0x89   : > { %2164 = vst [vmem:[#allocation25_spill] sm:$0xff] %v1903_v17  ;;  %693 = vst [vmem:[#allocation4 + $0x70] sm:$0xff] %v689_v58  ;;  %v1910_v29 = vpop.eup %1317  ;;  %v474_v34 = vmul.f32 %v1316_v25, %v1774_v41  ;;  %v478_v47 = vmul.f32 %v1316_v25, %v1777_v50  ;;  %v482_v42 = vmul.f32 %v1316_v25, %v1783_v55  ;;  %v603_v55 = vld [vmem:[#allocation2 + $0x50] sm:$0xff]  ;;  %vm506_vm12 = vcmp.eq.s32.totalorder %v1647_v19, 255 }
  0x8a   : > { %2165 = vst [vmem:[#allocation26_spill] sm:$0xff] %v1907_v8  ;;  %694 = vst [vmem:[#allocation4 + $0x20] sm:$0xff] %v690_v2  ;;  %v1915_v52 = vpop.eup %1319  ;;  %1325 = vrcp.f32 %v1907_v8  ;;  %v451_v22 = vadd.f32 %v1910_v29, %v1901_v23  ;;  %v539_v8 = vld [vmem:[#allocation2] sm:$0xff]  ;;  %vm888_vm0 = vcmask (%p827_p7), 1041409   ;;  %vm890_vm1 = vcmask (%p827_p7), 1042434  }
  0x8b   : > { %v1921_v4 = vpop.eup %1321  ;;  %v1924_v41 = vmul.f32 %v1690_v46, %v474_v34  ;;  %v566_v50 = vmul.f32 %v474_v34, %v1679_v38  ;;  %v633_v3 = vmul.f32 %v478_v47, %v1679_v38  ;;  %v1935_v58 = vmul.f32 %v1828_v48, %v478_v47  ;;  %v670_v46 = vld [vmem:[#allocation2 + $0x40] sm:$0xff] }
  0x8c   : > { %v1324_v39 = vpop.eup %1323  ;;  %v452_v49 = vadd.f32 %v1915_v52, %v451_v22  ;;  %v1937_v2 = vmul.f32 %v649_v15, %v482_v42  ;;  %v1940_v34 = vmul.f32 %v1316_v25, %v1790_v61  ;;  %v700_v43 = vmul.f32 %v482_v42, %v1679_v38  ;;  %v563_v22 = vld [vmem:[#allocation3 + $0x68] sm:$0xff]  ;;  %v630_v42 = vld [vmem:[#allocation3 + $0x30] sm:$0xff] }
  0x8d   : > { %v542_v17 = vadd.f32 %v538_v54, %v1924_v41  ;;  %v475_v36 = vmul.f32 %v1324_v39, %v1796_v0  ;;  %v570_v26 = vadd.f32 %v566_v50, %v562_v59  ;;  %v607_v48 = vadd.f32 %v603_v55, %v1935_v58  ;;  %v604_v25 = vld [vmem:[#allocation2 + $0x68] sm:$0xff]  ;;  %v671_v55 = vld [vmem:[#allocation2 + $0x20] sm:$0xff] }
  0x8e   : > { %v1946_v13 = vadd.f32 %v1921_v4, %v452_v49  ;;  %v479_v15 = vmul.f32 %v1324_v39, %v1804_v6  ;;  %v637_v47 = vadd.f32 %v633_v3, %v629_v11  ;;  %v674_v54 = vadd.f32 %v670_v46, %v1937_v2  ;;  %v697_v46 = vld [vmem:[#allocation3 + $0x78] sm:$0xff] }
  0x8f   : > { %546 = vst [vmem:[#allocation2 + $0x30] sm:$0xff] %v542_v17  ;;  %v1951_v61 = vmul.f32 %v1722_v1, %v475_v36  ;;  %574 = vst [vmem:[#allocation3 + $0x28] sm:$0xff] %v570_v26  ;;  %v567_v0 = vmul.f32 %v475_v36, %v1685_v44  ;;  %v1958_v59 = vsel %vm713_vm9, %v1685_v44, 0.0  ;;  %v483_v36 = vmul.f32 %v1324_v39, %v1808_v31  ;;  %v737_v1 = vld [vmem:[#allocation2 + $0x60] sm:$0xff] }
  0x90   : > { %1327 = vrcp.f32 %v1946_v13  ;;  %611 = vst [vmem:[#allocation2 + $0x50] sm:$0xff] %v607_v48  ;;  %v1962_v17 = vmul.f32 %v1838_v7, %v479_v15  ;;  %641 = vst [vmem:[#allocation3 + $0x48] sm:$0xff] %v637_v47  ;;  %v634_v26 = vmul.f32 %v479_v15, %v1685_v44  ;;  %v704_v60 = vadd.f32 %v700_v43, %v696_v21  ;;  %v750_v43 = vld [vmem:[#allocation4 + $0x58] sm:$0xff]  ;;  %v752_v48 = vld [vmem:[#allocation4 + $0x50] sm:$0xff] }
  0x91   : > { %v543_v6 = vadd.f32 %v539_v8, %v1951_v61  ;;  %v571_v50 = vadd.f32 %v567_v0, %v563_v22  ;;  %678 = vst [vmem:[#allocation2 + $0x40] sm:$0xff] %v674_v54  ;;  %v1969_v11 = vmul.f32 %v1931_v12, %v1940_v34  ;;  %v1973_v49 = vmul.f32 %v1871_v56, %v483_v36  ;;  %v751_v22 = vld [vmem:[#allocation4 + $0x30] sm:$0xff]  ;;  %v753_v54 = vld [vmem:[#allocation4 + $0x78] sm:$0xff] }
  0x92   : > { %v608_v3 = vadd.f32 %v604_v25, %v1962_v17  ;;  %v638_v7 = vadd.f32 %v634_v26, %v630_v42  ;;  %708 = vst [vmem:[#allocation3 + $0x20] sm:$0xff] %v704_v60  ;;  %v701_v31 = vmul.f32 %v483_v36, %v1685_v44  ;;  %v487_v8 = vmul.f32 %v1324_v39, %v1816_v35  ;;  %v738_v15 = vld [vmem:[#allocation2 + $0x70] sm:$0xff] }
  0x93   : > { %547 = vst [vmem:[#allocation2] sm:$0xff] %v543_v6  ;;  %575 = vst [vmem:[#allocation3 + $0x68] sm:$0xff] %v571_v50  ;;  %v741_v21 = vadd.f32 %v737_v1, %v1969_v11  ;;  %v675_v56 = vadd.f32 %v671_v55, %v1973_v49  ;;  %v1986_v25 = vsel %vm714_vm10, %v1742_v20, 0.0  ;;  %v754_v35 = vadd.f32 %v750_v43, %v1931_v12  ;;  %v540_v55 = vld [vmem:[#allocation2 + $0x58] sm:$0xff]  ;;  %v564_v60 = vld [vmem:[#allocation3 + $0x10] sm:$0xff] }
  0x94   : > { %612 = vst [vmem:[#allocation2 + $0x68] sm:$0xff] %v608_v3  ;;  %642 = vst [vmem:[#allocation3 + $0x30] sm:$0xff] %v638_v7  ;;  %v705_v47 = vadd.f32 %v701_v31, %v697_v46  ;;  %v1981_v0 = vmul.f32 %v1958_v59, %v487_v8  ;;  %v755_v39 = vadd.f32 %v751_v22, %v1958_v59  ;;  %v1999_v50 = vsel %vm715_vm11, %v1800_v14, 0.0  ;;  %v605_v3 = vld [vmem:[#allocation2 + $0x8] sm:$0xff]  ;;  %v631_v46 = vld [vmem:[#allocation3 + $0x70] sm:$0xff] }
  0x95   : > { %745 = vst [vmem:[#allocation2 + $0x60] sm:$0xff] %v741_v21  ;;  %679 = vst [vmem:[#allocation2 + $0x20] sm:$0xff] %v675_v56  ;;  %v756_v42 = vadd.f32 %v752_v48, %v1986_v25  ;;  %v590_v36 = vadd.f32 %v1935_v58, %v1924_v41  ;;  %v2003_v41 = vmul.f32 %v1931_v12, %v1621_v5  ;;  %v672_v21 = vld [vmem:[#allocation2 + $0x10] sm:$0xff]  ;;  %v698_v43 = vld [vmem:[#allocation3 + $0x18] sm:$0xff]  ;;  %1329 = vlog2.f32 %v1811_v9 }
  0x96   : > { %709 = vst [vmem:[#allocation3 + $0x78] sm:$0xff] %v705_v47  ;;  %v742_v1 = vadd.f32 %v738_v15, %v1981_v0  ;;  %758 = vst [vmem:[#allocation4 + $0x58] sm:$0xff] %v754_v35  ;;  %v739_v15 = vld [vmem:[#allocation2 + $0x78] sm:$0xff]  ;;  %v763_v47 = vld [vmem:[#allocation3] sm:$0xff]  ;;  %1331 = vlog2.f32 %v1833_v51  ;;  %vm892_vm2 = vcmask (%p827_p7), 1043459   ;;  %vm895_vm3 = vcmask (%p827_p7), 1043456  }
  0x97   : > { %v1326_v26 = vpop.eup %1325  ;;  %759 = vst [vmem:[#allocation4 + $0x30] sm:$0xff] %v755_v39  ;;  %760 = vst [vmem:[#allocation4 + $0x50] sm:$0xff] %v756_v42  ;;  %v764_v35 = vld [vmem:[#allocation3 + $0x8] sm:$0xff]  ;;  %v2170_v51 = vld [vmem:[#allocation24_spill] sm:$0xff]  ;;  %vm1025_vm4 = vcmask (%p827_p7), 3072   ;;  %vm1048_vm5 = vcmask (%p827_p7), 0  }
  0x98   : > { %v476_v16 = vmul.f32 %v1326_v26, %v1862_v53  ;;  %v480_v6 = vmul.f32 %v1326_v26, %v1867_v33  ;;  %v484_v57 = vmul.f32 %v1326_v26, %v1877_v10  ;;  %746 = vst [vmem:[#allocation2 + $0x70] sm:$0xff] %v742_v1  ;;  %v2006_v53 = vmul.f32 %v1326_v26, %v1888_v30  ;;  %v541_v1 = vld [vmem:[#allocation2 + $0x18] sm:$0xff]  ;;  %v2167_v9 = vld [vmem:[#allocation23_spill] sm:$0xff] }
  0x99   : > { %v757_v33 = vadd.f32 %v753_v54, %v1999_v50  ;;  %v767_v30 = vmul.f32 %v1940_v34, %v1679_v38  ;;  %vm1028_vm6 = vcmask (%p827_p7), 11272   ;;  %vm1031_vm7 = vcmask (%p827_p7), 19472  }
  0x9a   : > { %v524_v10 = vmul.f32 %v1753_v27, %v476_v16  ;;  %v568_v58 = vmul.f32 %v476_v16, %v1742_v20  ;;  %v588_v7 = vmul.f32 %v1843_v63, %v480_v6  ;;  %v635_v31 = vmul.f32 %v480_v6, %v1742_v20  ;;  %v565_v16 = vld [vmem:[#allocation3 + $0x40] sm:$0xff]  ;;  %v606_v6 = vld [vmem:[#allocation2 + $0x48] sm:$0xff] }
  0x9b   : > { %v2014_v5 = vmul.f32 %v1874_v45, %v484_v57  ;;  %v702_v12 = vmul.f32 %v484_v57, %v1742_v20  ;;  %761 = vst [vmem:[#allocation4 + $0x78] sm:$0xff] %v757_v33  ;;  %v768_v27 = vmul.f32 %v487_v8, %v1685_v44  ;;  %v657_v63 = vadd.f32 %v1937_v2, %v590_v36  ;;  %v632_v33 = vld [vmem:[#allocation3 + $0x38] sm:$0xff] }
  0x9c   : > { %v544_v22 = vadd.f32 %v540_v55, %v524_v10  ;;  %v572_v48 = vadd.f32 %v568_v58, %v564_v60  ;;  %v609_v56 = vadd.f32 %v605_v3, %v588_v7  ;;  %v639_v42 = vadd.f32 %v635_v31, %v631_v46  ;;  %v699_v58 = vld [vmem:[#allocation3 + $0x58] sm:$0xff] }
  0x9d   : > { %v1328_v39 = vpop.eup %1327  ;;  %v676_v45 = vadd.f32 %v672_v21, %v2014_v5  ;;  %v706_v54 = vadd.f32 %v702_v12, %v698_v43  ;;  %v2024_v26 = vmul.f32 %v1986_v25, %v2006_v53  ;;  %v729_v36 = vmul.f32 %v1958_v59, %v1657_v24  ;;  %v673_v59 = vld [vmem:[#allocation2 + $0x38] sm:$0xff] }
  0x9e   : > { %548 = vst [vmem:[#allocation2 + $0x58] sm:$0xff] %v544_v22  ;;  %v477_v34 = vmul.f32 %v1328_v39, %v1901_v23  ;;  %576 = vst [vmem:[#allocation3 + $0x10] sm:$0xff] %v572_v48  ;;  %v481_v8 = vmul.f32 %v1328_v39, %v1910_v29  ;;  %v485_v2 = vmul.f32 %v1328_v39, %v1915_v52  ;;  %vm1065_vm8 = vcmask (%p827_p7), 8200  }
  0x9f   : > { %613 = vst [vmem:[#allocation2 + $0x8] sm:$0xff] %v609_v56  ;;  %643 = vst [vmem:[#allocation3 + $0x70] sm:$0xff] %v639_v42  ;;  %v743_v57 = vadd.f32 %v739_v15, %v2024_v26  ;;  %v489_v55 = vmul.f32 %v1328_v39, %v1921_v4  ;;  %v771_v23 = vadd.f32 %v767_v30, %v763_v47 }
  0xa0   : > { %680 = vst [vmem:[#allocation2 + $0x10] sm:$0xff] %v676_v45  ;;  %710 = vst [vmem:[#allocation3 + $0x18] sm:$0xff] %v706_v54  ;;  %v772_v60 = vadd.f32 %v768_v27, %v764_v35  ;;  %v525_v3 = vmul.f32 %v1819_v40, %v477_v34  ;;  %v569_v29 = vmul.f32 %v477_v34, %v1800_v14  ;;  %v740_v40 = vld [vmem:[#allocation2 + $0x28] sm:$0xff]  ;;  %v818_v54 = vld [vmem:[#allocation6 + $0x10] sm:$0xff] }
  0xa1   : > { %v589_v52 = vmul.f32 %v1851_v28, %v481_v8  ;;  %v636_v24 = vmul.f32 %v481_v8, %v1800_v14  ;;  %v591_v46 = vadd.f32 %v1962_v17, %v1951_v61  ;;  %v656_v31 = vmul.f32 %v1886_v18, %v485_v2  ;;  %747 = vst [vmem:[#allocation2 + $0x78] sm:$0xff] %v743_v57  ;;  %v765_v17 = vld [vmem:[#allocation3 + $0x60] sm:$0xff]  ;;  %v766_v18 = vld [vmem:[#allocation3 + $0x50] sm:$0xff] }
  0xa2   : > { %v703_v4 = vmul.f32 %v485_v2, %v1800_v14  ;;  %v2042_v21 = vadd.f32 %v1969_v11, %v657_v63  ;;  %775 = vst [vmem:[#allocation3] sm:$0xff] %v771_v23  ;;  %776 = vst [vmem:[#allocation3 + $0x8] sm:$0xff] %v772_v60  ;;  %v545_v28 = vadd.f32 %v541_v1, %v525_v3  ;;  %v2171_v8 = vld [vmem:[#allocation20_spill] sm:$0xff] }
  0xa3   : > { %v573_v43 = vadd.f32 %v569_v29, %v565_v16  ;;  %v610_v12 = vadd.f32 %v606_v6, %v589_v52  ;;  %v723_v30 = vmul.f32 %v1999_v50, %v489_v55  ;;  %v592_v27 = vadd.f32 %v588_v7, %v524_v10 }
  0xa4   : > { %v640_v22 = vadd.f32 %v636_v24, %v632_v33  ;;  %v677_v48 = vadd.f32 %v673_v59, %v656_v31  ;;  %v707_v61 = vadd.f32 %v703_v4, %v699_v58  ;;  %549 = vst [vmem:[#allocation2 + $0x18] sm:$0xff] %v545_v28  ;;  %v593_v56 = vadd.f32 %v589_v52, %v525_v3  ;;  %v1330_v52 = vpop.eup %1329 }
  0xa5   : > { %577 = vst [vmem:[#allocation3 + $0x40] sm:$0xff] %v573_v43  ;;  %614 = vst [vmem:[#allocation2 + $0x48] sm:$0xff] %v610_v12  ;;  %v744_v11 = vadd.f32 %v740_v40, %v723_v30  ;;  %v769_v63 = vmul.f32 %v2006_v53, %v1742_v20  ;;  %v770_v15 = vmul.f32 %v489_v55, %v1800_v14  ;;  %vm509_vm15 = vcmp.eq.s32.totalorder %v2171_v8, 255  ;;  %v966_v8 = vld [vmem:[#allocation4 + $0x68] sm:$0xff] (%p827_p7) }
  0xa6   : > { %644 = vst [vmem:[#allocation3 + $0x38] sm:$0xff] %v640_v22  ;;  %681 = vst [vmem:[#allocation2 + $0x38] sm:$0xff] %v677_v48  ;;  %v730_v10 = vmul.f32 %v1986_v25, %v1717_v62  ;;  %v2054_v7 = vadd.f32 %v2003_v41, %v1890_v37  ;;  %v658_v47 = vadd.f32 %v1973_v49, %v591_v46  ;;  %v2166_v62 = vld [vmem:[#allocation16_spill] sm:$0xff]  ;;  %v815_v25 = vld [vmem:[#allocation6 + $0x8] sm:$0xff]  ;;  %v510_v37 = vsel %vm506_vm12, 0.0, %v1679_v38 }
  0xa7   : > { %711 = vst [vmem:[#allocation3 + $0x58] sm:$0xff] %v707_v61  ;;  %v731_v53 = vmul.f32 %v1999_v50, %v1767_v32  ;;  %748 = vst [vmem:[#allocation2 + $0x28] sm:$0xff] %v744_v11  ;;  %v773_v35 = vadd.f32 %v769_v63, %v765_v17  ;;  %v774_v39 = vadd.f32 %v770_v15, %v766_v18  ;;  %vm507_vm13 = vcmp.eq.s32.totalorder %v2166_v62, 255  ;;  %v2168_v49 = vld [vmem:[#allocation26_spill] sm:$0xff]  ;;  %v816_v50 = vld [vmem:[#allocation6 + $0x18] sm:$0xff] }
  0xa8   : > { %v659_v42 = vadd.f32 %v2014_v5, %v592_v27  ;;  %v733_v19 = vadd.f32 %v729_v36, %v2167_v9  ;;  %v660_v45 = vadd.f32 %v656_v31, %v593_v56  ;;  %1333 = vlog2.f32 %v2168_v49  ;;  %v2169_v32 = vld [vmem:[#allocation18_spill] sm:$0xff]  ;;  %v2172_v38 = vld [vmem:[#allocation25_spill] sm:$0xff] }
  0xa9   : > { %777 = vst [vmem:[#allocation3 + $0x60] sm:$0xff] %v773_v35  ;;  %778 = vst [vmem:[#allocation3 + $0x50] sm:$0xff] %v774_v39  ;;  %vm508_vm14 = vcmp.eq.s32.totalorder %v2169_v32, 255  ;;  %v817_v41 = vld [vmem:[#allocation6] sm:$0xff]  ;;  %v511_v5 = vsel %vm507_vm13, 0.0, %v1685_v44  ;;  %v734_v34 = vadd.f32 %v730_v10, %v2170_v51  ;;  %1335 = vlog2.f32 %v1946_v13  ;;  %v791_v10 = vld [vmem:[#allocation5 + $0x18] sm:$0xff] }
  0xaa   : > { %v512_v2 = vsel %vm508_vm14, 0.0, %v1742_v20  ;;  %v513_v36 = vsel %vm509_vm15, 0.0, %v1800_v14  ;;  %v735_v1 = vadd.f32 %v731_v53, %v2172_v38  ;;  %v819_v16 = vadd.f32 %v815_v25, %v510_v37  ;;  %v2175_v61 = vld [vmem:[#allocation21_spill] sm:$0xff]  ;;  %v2176_v63 = vld [vmem:[#allocation22_spill] sm:$0xff]  ;;  %v794_v32 = vld [vmem:[#allocation5 + $0x10] sm:$0xff] }
  0xab   : > { %v725_v6 = vadd.f32 %v1981_v0, %v658_v47  ;;  %v820_v57 = vadd.f32 %v816_v50, %v511_v5  ;;  %v821_v55 = vadd.f32 %v817_v41, %v512_v2  ;;  %v822_v23 = vadd.f32 %v818_v54, %v513_v36  ;;  %v1332_v0 = vpop.eup %1331  ;;  %v793_v25 = vld [vmem:[#allocation5 + $0x8] sm:$0xff]  ;;  %v963_v51 = vld [vmem:[#allocation4] sm:$0xff] (%p827_p7) }
  0xac   : > { %v726_v44 = vadd.f32 %v2024_v26, %v659_v42  ;;  %823 = vst [vmem:[#allocation6 + $0x8] sm:$0xff] %v819_v16  ;;  %v783_v60 = vsub.f32 1.0, %v2042_v21  ;;  %v727_v13 = vadd.f32 %v723_v30, %v660_v45  ;;  %v463_v24 = vmul.f32 0.6931472, %v1330_v52  ;;  %v2173_v26 = vld [vmem:[#allocation17_spill] sm:$0xff]  ;;  %v2174_v30 = vld [vmem:[#allocation19_spill] sm:$0xff] }
  0xad   : > { %824 = vst [vmem:[#allocation6 + $0x18] sm:$0xff] %v820_v57  ;;  %825 = vst [vmem:[#allocation6] sm:$0xff] %v821_v55  ;;  %v784_v20 = vsub.f32 1.0, %v725_v6  ;;  %v465_v40 = vmul.f32 0.6931472, %v1332_v0  ;;  %v792_v42 = vld [vmem:[#allocation5] sm:$0xff] }
  0xae   : > { %826 = vst [vmem:[#allocation6 + $0x10] sm:$0xff] %v822_v23  ;;  %v785_v3 = vsub.f32 1.0, %v726_v44  ;;  %v787_v14 = vmax.f32 %v783_v60, 0.0  ;;  %v786_v29 = vsub.f32 1.0, %v727_v13  ;;  %v470_v4 = vadd.f32 %v463_v24, %v2173_v26  ;;  %v965_v38 = vld [vmem:[#allocation4 + $0x60] sm:$0xff] (%p827_p7)  ;;  %v971_v6 = vld [vmem:[#allocation4 + $0x28] sm:$0xff] (%p827_p7) }
  0xaf   : > { %v788_v33 = vmax.f32 %v784_v20, 0.0  ;;  %v471_v27 = vadd.f32 %v465_v40, %v2174_v30  ;;  %v970_v16 = vld [vmem:[#allocation4 + $0x40] sm:$0xff] (%p827_p7)  ;;  %v972_v57 = vld [vmem:[#allocation4 + $0x70] sm:$0xff] (%p827_p7)  ;;  %v969_v23 = vld [vmem:[#allocation4 + $0x38] sm:$0xff] (%p827_p7) }
  0xb0   : > { %v789_v59 = vmax.f32 %v785_v3, 0.0  ;;  %v795_v46 = vmul.f32 0.25, %v787_v14  ;;  %v790_v31 = vmax.f32 %v786_v29, 0.0  ;;  %v779_v12 = vsub.f32 %v470_v4, %v2054_v7  ;;  %v974_v44 = vld [vmem:[#allocation4 + $0x58] sm:$0xff] (%p827_p7)  ;;  %v975_v60 = vld [vmem:[#allocation4 + $0x30] sm:$0xff] (%p827_p7)  ;;  %v973_v20 = vld [vmem:[#allocation4 + $0x20] sm:$0xff] (%p827_p7) }
  0xb1   : > { %v796_v43 = vmul.f32 0.25, %v788_v33  ;;  %v780_v11 = vsub.f32 %v471_v27, %v733_v19  ;;  %v996_v13 = vadd.f32 (%p827_p7), %v971_v6, %v970_v16  ;;  %v976_v3 = vld [vmem:[#allocation4 + $0x50] sm:$0xff] (%p827_p7)  ;;  %v1005_v52 = vadd.f32 (%p827_p7), %v975_v60, %v974_v44  ;;  %v977_v24 = vld [vmem:[#allocation4 + $0x78] sm:$0xff] (%p827_p7)  ;;  %v837_v40 = vld [vmem:[#allocation2 + $0x68] sm:$0xff] (%p827_p7) }
  0xb2   : > { %v797_v48 = vmul.f32 0.25, %v789_v59  ;;  %v798_v18 = vmul.f32 0.25, %v790_v31  ;;  %v799_v56 = vmul.f32 %v795_v46, %v779_v12  ;;  %v832_v33 = vld [vmem:[#allocation2 + $0x30] sm:$0xff] (%p827_p7)  ;;  %v833_v59 = vld [vmem:[#allocation2] sm:$0xff] (%p827_p7)  ;;  %v835_v12 = vld [vmem:[#allocation2 + $0x18] sm:$0xff] (%p827_p7) }
  0xb3   : > { %v800_v35 = vmul.f32 %v796_v43, %v780_v11  ;;  %v997_v0 = vadd.f32 (%p827_p7), %v996_v13, %v972_v57  ;;  %v1006_v26 = vadd.f32 (%p827_p7), %v1005_v52, %v976_v3  ;;  %v836_v4 = vld [vmem:[#allocation2 + $0x50] sm:$0xff] (%p827_p7)  ;;  %v840_v30 = vld [vmem:[#allocation2 + $0x40] sm:$0xff] (%p827_p7)  ;;  %v900_v44 = vld [vmem:[#allocation3 + $0x68] sm:$0xff] (%p827_p7) }
  0xb4   : > { %v803_v53 = vmul.f32 %v799_v56, %v510_v37  ;;  %v962_v37 = vld [vmem:[#allocation4 + $0x8] sm:$0xff] (%p827_p7)  ;;  %v841_v27 = vld [vmem:[#allocation2 + $0x20] sm:$0xff] (%p827_p7)  ;;  %v842_v56 = vld [vmem:[#allocation2 + $0x10] sm:$0xff] (%p827_p7) }
  0xb5   : > { %v1334_v58 = vpop.eup %1333  ;;  %v804_v7 = vmul.f32 %v800_v35, %v511_v5  ;;  %v978_v5 = vadd.f32 (%p827_p7), %v963_v51, %v962_v37  ;;  %v998_v43 = vadd.f32 (%p827_p7), %v997_v0, %v973_v20  ;;  %v844_v11 = vld [vmem:[#allocation2 + $0x60] sm:$0xff] (%p827_p7) }
  0xb6   : > { %v1336_v21 = vpop.eup %1335  ;;  %v467_v28 = vmul.f32 0.6931472, %v1334_v58  ;;  %v807_v9 = vadd.f32 %v803_v53, %v791_v10  ;;  %v834_v58 = vld [vmem:[#allocation2 + $0x58] sm:$0xff] (%p827_p7)  ;;  %v845_v10 = vld [vmem:[#allocation2 + $0x70] sm:$0xff] (%p827_p7)  ;;  %v866_v53 = vadd.f32 (%p827_p7), %v841_v27, %v840_v30 }
  0xb7   : > { %v469_v22 = vmul.f32 0.6931472, %v1336_v21  ;;  %v808_v50 = vadd.f32 %v804_v7, %v792_v42  ;;  %v838_v21 = vld [vmem:[#allocation2 + $0x8] sm:$0xff] (%p827_p7) }
  0xb8   : > { %v472_v17 = vadd.f32 %v467_v28, %v2175_v61  ;;  %811 = vst [vmem:[#allocation5 + $0x18] sm:$0xff] %v807_v9  ;;  %v848_v28 = vadd.f32 (%p827_p7), %v833_v59, %v832_v33  ;;  %v846_v9 = vld [vmem:[#allocation2 + $0x78] sm:$0xff] (%p827_p7) }
  0xb9   : > { %v473_v15 = vadd.f32 %v469_v22, %v2176_v63  ;;  %812 = vst [vmem:[#allocation5] sm:$0xff] %v808_v50  ;;  %v857_v22 = vadd.f32 (%p827_p7), %v837_v40, %v836_v4 }
  0xba   : > { %v781_v47 = vsub.f32 %v472_v17, %v734_v34  ;;  %v964_v34 = vld [vmem:[#allocation4 + $0x48] sm:$0xff] (%p827_p7)  ;;  %v1007_v17 = vadd.f32 (%p827_p7), %v1006_v26, %v977_v24  ;;  %v849_v63 = vadd.f32 (%p827_p7), %v848_v28, %v834_v58  ;;  %v901_v24 = vld [vmem:[#allocation3 + $0x10] sm:$0xff] (%p827_p7) }
  0xbb   : > { %v782_v39 = vsub.f32 %v473_v15, %v735_v1  ;;  %v967_v1 = vld [vmem:[#allocation4 + $0x18] sm:$0xff] (%p827_p7)  ;;  %v999_v15 = vrot.slane (%p827_p7), %v998_v43, 4  ;;  %v903_v28 = vld [vmem:[#allocation3 + $0x48] sm:$0xff] (%p827_p7) }
  0xbc   : > { %v801_v62 = vmul.f32 %v797_v48, %v781_v47  ;;  %v987_v55 = vadd.f32 (%p827_p7), %v967_v1, %v966_v8  ;;  %v858_v47 = vadd.f32 (%p827_p7), %v857_v22, %v838_v21  ;;  %v1008_v42 = vrot.slane (%p827_p7), %v1007_v17, 4  ;;  %v902_v21 = vld [vmem:[#allocation3 + $0x40] sm:$0xff] (%p827_p7)  ;;  %v905_v22 = vld [vmem:[#allocation3 + $0x70] sm:$0xff] (%p827_p7) }
  0xbd   : > { %v802_v45 = vmul.f32 %v798_v18, %v782_v39  ;;  %v839_v18 = vld [vmem:[#allocation2 + $0x48] sm:$0xff] (%p827_p7)  ;;  %v850_v7 = vadd.f32 (%p827_p7), %v849_v63, %v835_v12  ;;  %v908_v63 = vld [vmem:[#allocation3 + $0x78] sm:$0xff] (%p827_p7) }
  0xbe   : > { %v805_v49 = vmul.f32 %v801_v62, %v512_v2  ;;  %v968_v2 = vld [vmem:[#allocation4 + $0x10] sm:$0xff] (%p827_p7)  ;;  %v843_v62 = vld [vmem:[#allocation2 + $0x38] sm:$0xff] (%p827_p7) }
  0xbf   : > { %v806_v41 = vmul.f32 %v802_v45, %v513_v36  ;;  %831 = sbr.rel (!%p827_p7) target bundleno = 371 (0x173), region = 44  ;;  %v979_v36 = vadd.f32 (%p827_p7), %v978_v5, %v964_v34  ;;  %v988_v29 = vadd.f32 (%p827_p7), %v987_v55, %v968_v2  ;;  %v859_v45 = vadd.f32 (%p827_p7), %v858_v47, %v839_v18 }
  0xc0   : > { %v809_v54 = vadd.f32 %v805_v49, %v793_v25  ;;  %v1000_v25 = vadd.f32 (%p827_p7), %v999_v15, %v998_v43  ;;  %v867_v49 = vadd.f32 (%p827_p7), %v866_v53, %v842_v56  ;;  %v851_v37 = vrot.slane (%p827_p7), %v850_v7, 4  ;;  %v904_v43 = vld [vmem:[#allocation3 + $0x30] sm:$0xff] (%p827_p7)  ;;  %v911_v15 = vld [vmem:[#allocation3] sm:$0xff] (%p827_p7) }
  0xc1   : > { %v810_v19 = vadd.f32 %v806_v41, %v794_v32  ;;  %v980_v14 = vadd.f32 (%p827_p7), %v979_v36, %v965_v38  ;;  %v989_v31 = vadd.f32 (%p827_p7), %v988_v29, %v969_v23  ;;  %v875_v32 = vadd.f32 (%p827_p7), %v845_v10, %v844_v11  ;;  %v899_v23 = vld [vmem:[#allocation3 + $0x28] sm:$0xff] (%p827_p7) }
  0xc2   : > { %813 = vst [vmem:[#allocation5 + $0x8] sm:$0xff] %v809_v54  ;;  %v1009_v54 = vadd.f32 (%p827_p7), %v1008_v42, %v1007_v17  ;;  %v1001_v51 = vrot.slane (%p827_p7), %v1000_v25, 2  ;;  %v860_v34 = vrot.slane (%p827_p7), %v859_v45, 4  ;;  %v868_v8 = vadd.f32 (%p827_p7), %v867_v49, %v843_v62  ;;  %v912_v10 = vld [vmem:[#allocation3 + $0x8] sm:$0xff] (%p827_p7)  ;;  %v1033_v42 = vld [vmem:[#allocation5 + $0x18] sm:$0xff] (%p827_p7)  ;;  %v1034_v62 = vld [vmem:[#allocation5] sm:$0xff] (%p827_p7) }
  0xc3   : > { %814 = vst [vmem:[#allocation5 + $0x10] sm:$0xff] %v810_v19  ;;  %v981_v46 = vrot.slane (%p827_p7), %v980_v14, 4  ;;  %v990_v61 = vrot.slane (%p827_p7), %v989_v31, 4  ;;  %v847_v19 = vld [vmem:[#allocation2 + $0x28] sm:$0xff] (%p827_p7)  ;;  %v876_v5 = vadd.f32 (%p827_p7), %v875_v32, %v846_v9  ;;  %v852_v16 = vadd.f32 (%p827_p7), %v851_v37, %v850_v7  ;;  %v906_v49 = vld [vmem:[#allocation3 + $0x38] sm:$0xff] (%p827_p7) }
  0xc4   : > { %v1010_v2 = vrot.slane %v1009_v54, 2  ;;  %v1002_v6 = vadd.f32 %v1001_v51, %v1000_v25  ;;  %v861_v57 = vadd.f32 %v860_v34, %v859_v45  ;;  %v869_v36 = vrot.slane %v868_v8, 4  ;;  %v909_v32 = vld [vmem:[#allocation3 + $0x18] sm:$0xff]  ;;  %v1050_v34 = vld [vmem:[#allocation6 + $0x8] sm:$0xff] }
  0xc5   : > { %v982_v48 = vadd.f32 %v981_v46, %v980_v14  ;;  %v991_v39 = vadd.f32 %v990_v61, %v989_v31  ;;  %v877_v55 = vadd.f32 %v876_v5, %v847_v19  ;;  %v853_v3 = vrot.slane %v852_v16, 2 }
  0xc6   : > { %v1011_v20 = vadd.f32 %v1010_v2, %v1009_v54  ;;  %v1003_v14 = vrot.slane %v1002_v6, 1  ;;  %v862_v29 = vrot.slane %v861_v57, 2  ;;  %v870_v52 = vadd.f32 %v869_v36, %v868_v8  ;;  %v1051_v8 = vld [vmem:[#allocation6 + $0x18] sm:$0xff] }
  0xc7   : > { %v983_v35 = vrot.slane %v982_v48, 2  ;;  %v992_v41 = vrot.slane %v991_v39, 2  ;;  %v878_v33 = vrot.slane %v877_v55, 4  ;;  %v854_v58 = vadd.f32 %v853_v3, %v852_v16  ;;  %v910_v2 = vld [vmem:[#allocation3 + $0x58] sm:$0xff]  ;;  %v914_v16 = vld [vmem:[#allocation3 + $0x50] sm:$0xff] }
  0xc8   : > { %v1012_v59 = vrot.slane %v1011_v20, 1  ;;  %v915_v46 = vadd.f32 %v900_v44, %v899_v23  ;;  %v1004_v31 = vadd.f32 %v1003_v14, %v1002_v6  ;;  %v863_v26 = vadd.f32 %v862_v29, %v861_v57 }
  0xc9   : > { %v984_v50 = vadd.f32 %v983_v35, %v982_v48  ;;  %v993_v1 = vadd.f32 %v992_v41, %v991_v39  ;;  %v871_v4 = vrot.slane %v870_v52, 2  ;;  %v879_v40 = vadd.f32 %v878_v33, %v877_v55  ;;  %v907_v48 = vld [vmem:[#allocation3 + $0x20] sm:$0xff]  ;;  %v1035_v51 = vld [vmem:[#allocation5 + $0x8] sm:$0xff] }
  0xca   : > { %v1013_v12 = vadd.f32 %v1012_v59, %v1011_v20  ;;  %v855_v27 = vrot.slane %v854_v58, 1  ;;  %v916_v61 = vadd.f32 %v915_v46, %v901_v24  ;;  %v864_v18 = vrot.slane %v863_v26, 1  ;;  %v1036_v44 = vld [vmem:[#allocation5 + $0x10] sm:$0xff] }
  0xcb   : > { %v985_v38 = vrot.slane %v984_v50, 1  ;;  %v994_v13 = vrot.slane %v993_v1, 1  ;;  %v872_v56 = vadd.f32 %v871_v4, %v870_v52  ;;  %v880_v11 = vrot.slane %v879_v40, 2 }
  0xcc   : > { %v856_v53 = vadd.f32 %v855_v27, %v854_v58  ;;  %v917_v35 = vadd.f32 %v916_v61, %v902_v21  ;;  %v924_v39 = vadd.f32 %v904_v43, %v903_v28  ;;  %v865_v7 = vadd.f32 %v864_v18, %v863_v26 }
  0xcd   : > { %v986_v60 = vadd.f32 %v985_v38, %v984_v50  ;;  %v995_v0 = vadd.f32 %v994_v13, %v993_v1  ;;  %v873_v25 = vrot.slane %v872_v56, 1  ;;  %v881_v45 = vadd.f32 %v880_v11, %v879_v40  ;;  %v913_v50 = vld [vmem:[#allocation3 + $0x60] sm:$0xff] }
  0xce   : > { %v918_v41 = vrot.slane %v917_v35, 4  ;;  %v925_v54 = vadd.f32 %v924_v39, %v905_v22  ;;  %v933_v19 = vadd.f32 %v908_v63, %v907_v48  ;;  %v942_v37 = vadd.f32 %v912_v10, %v911_v15 }
  0xcf   : > { %v1018_v30 = vsel %vm888_vm0, %v995_v0, %v986_v60  ;;  %v874_v5 = vadd.f32 %v873_v25, %v872_v56  ;;  %v882_v38 = vrot.slane %v881_v45, 1  ;;  %v889_v1 = vsel %vm888_vm0, %v865_v7, %v856_v53  ;;  %v1052_v60 = vld [vmem:[#allocation6] sm:$0xff]  ;;  %v1053_v0 = vld [vmem:[#allocation6 + $0x10] sm:$0xff] }
  0xd0   : > { %v1019_v17 = vsel %vm890_vm1, %v1004_v31, %v1018_v30  ;;  %v1037_v6 = vadd.f32 %v1034_v62, %v1033_v42  ;;  %v919_v57 = vadd.f32 %v918_v41, %v917_v35  ;;  %v926_v36 = vadd.f32 %v925_v54, %v906_v49 }
  0xd1   : > { %v1020_v47 = vsel %vm892_vm2, %v1013_v12, %v1019_v17  ;;  %v934_v55 = vadd.f32 %v933_v19, %v909_v32  ;;  %v943_v23 = vadd.f32 %v942_v37, %v913_v50  ;;  %v883_v13 = vadd.f32 %v882_v38, %v881_v45 }
  0xd2   : > { %v1022_v9 = vsel %vm895_vm3, %v1020_v47, 0.0  ;;  %v891_v20 = vsel %vm890_vm1, %v874_v5, %v889_v1  ;;  %v1038_v3 = vadd.f32 %v1037_v6, %v1035_v51  ;;  %v1054_v14 = vadd.f32 %v1051_v8, %v1050_v34 }
  0xd3   : > { %1023 = vadd.xlane.f32.xlu1 %v1022_v9  ;;  %v920_v29 = vrot.slane %v919_v57, 2  ;;  %v927_v52 = vrot.slane %v926_v36, 4  ;;  %v935_v33 = vadd.f32 %v934_v55, %v910_v2  ;;  %v944_v24 = vadd.f32 %v943_v23, %v914_v16 }
  0xd4   : > { %v893_v59 = vsel %vm892_vm2, %v883_v13, %v891_v20  ;;  %v1039_v58 = vadd.f32 %v1038_v3, %v1036_v44  ;;  %v1055_v46 = vadd.f32 %v1054_v14, %v1052_v60 }
  0xd5   : > { %v896_v31 = vsel %vm895_vm3, %v893_v59, 0.0  ;;  %v921_v26 = vadd.f32 %v920_v29, %v919_v57  ;;  %v928_v4 = vadd.f32 %v927_v52, %v926_v36  ;;  %v936_v40 = vrot.slane %v935_v33, 4 }
  0xd6   : > { %897 = vadd.xlane.f32.xlu0 %v896_v31  ;;  %v945_v21 = vrot.slane %v944_v24, 4  ;;  %v1040_v28 = vrot.slane %v1039_v58, 4  ;;  %v1056_v43 = vadd.f32 %v1055_v46, %v1053_v0 }
  0xd7   : > { %v922_v12 = vrot.slane %v921_v26, 1  ;;  %v929_v30 = vrot.slane %v928_v4, 2  ;;  %v937_v27 = vadd.f32 %v936_v40, %v935_v33 }
  0xd8   : > { %v946_v22 = vadd.f32 %v945_v21, %v944_v24  ;;  %v1041_v48 = vadd.f32 %v1040_v28, %v1039_v58  ;;  %v1057_v61 = vrot.slane %v1056_v43, 4 }
  0xd9   : > { %v930_v17 = vadd.f32 %v929_v30, %v928_v4  ;;  %v938_v18 = vrot.slane %v937_v27, 2  ;;  %v923_v15 = vadd.f32 %v922_v12, %v921_v26 }
  0xda   : > { %v947_v56 = vrot.slane %v946_v22, 2  ;;  %v1042_v11 = vrot.slane %v1041_v48, 2  ;;  %v1058_v63 = vadd.f32 %v1057_v61, %v1056_v43 }
  0xdb   : > { %v931_v10 = vrot.slane %v930_v17, 1  ;;  %v939_v47 = vadd.f32 %v938_v18, %v937_v27 }
  0xdc   : > { %v948_v53 = vadd.f32 %v947_v56, %v946_v22  ;;  %v1043_v35 = vadd.f32 %v1042_v11, %v1041_v48  ;;  %v1059_v39 = vrot.slane %v1058_v63, 2 }
  0xdd   : > { %v932_v42 = vadd.f32 %v931_v10, %v930_v17  ;;  %v940_v62 = vrot.slane %v939_v47, 1 }
  0xde   : > { %v949_v9 = vrot.slane %v948_v53, 1  ;;  %v1044_v7 = vrot.slane %v1043_v35, 1  ;;  %v1060_v25 = vadd.f32 %v1059_v39, %v1058_v63 }
  0xdf   : > { %v941_v45 = vadd.f32 %v940_v62, %v939_v47  ;;  %v955_v49 = vsel %vm888_vm0, %v932_v42, %v923_v15 }
  0xe0   : > { %v950_v32 = vadd.f32 %v949_v9, %v948_v53  ;;  %v1045_v50 = vadd.f32 %v1044_v7, %v1043_v35  ;;  %v1061_v41 = vrot.slane %v1060_v25, 1 }
  0xe1   : > { %v956_v54 = vsel %vm890_vm1, %v941_v45, %v955_v49 }
  0xe2   : > { %v957_v19 = vsel %vm892_vm2, %v950_v32, %v956_v54  ;;  %1046 = vadd.xlane.f32.xlu1 %v1045_v50  ;;  %v1062_v51 = vadd.f32 %v1061_v41, %v1060_v25 }
  0xe3   : > { %v959_v37 = vsel %vm895_vm3, %v957_v19, 0.0 }
  0xe4   : > { %960 = vadd.xlane.f32.xlu0 %v959_v37 }
  0xe8   : > { %1063 = vadd.xlane.f32.xlu0 %v1062_v51 }
 0x15c   : > { %v1024_v8 = vpop.xlane.xlu1 %1023 }
 0x15f   : > { %v898_v34 = vpop.xlane.xlu0 %897 }
 0x160   : > { %1026 = vst.msk [vmem:[%s2141_s2] sm:$0xf] %vm1025_vm4, %v898_v34  ;;  %v1030_v2 = vsub.f32 %v1024_v8, %v898_v34 }
 0x16b   : > { %v1047_v5 = vpop.xlane.xlu1 %1046 }
 0x16c   : > { %1049 = vst.msk [vmem:[#allocation12] sm:$0x1] %vm1048_vm5, %v1047_v5 }
 0x16d   : > { %v961_v38 = vpop.xlane.xlu0 %960 }
 0x16e   : > { %v1027_v1 = vsub.f32 %v961_v38, %v898_v34 }
 0x170   : > { %1029 = vst.msk [vmem:[%s2141_s2] sm:$0xf] %vm1028_vm6, %v1027_v1 }
 0x171   : > { %1032 = vst.msk [vmem:[%s2141_s2] sm:$0xf] %vm1031_vm7, %v1030_v2  ;;  %v1064_v16 = vpop.xlane.xlu0 %1063 }
 0x172   : > { %1066 = vst.msk [vmem:[#allocation12] sm:$0x1] %vm1065_vm8, %v1064_v16 }
 0x173 PF: > { %p2106_p10 = scmp.eq.s32.totalorder %s1197_s18, 1  ;;  %s1483_s8 = smov [#allocation12]  }
 0x174   : > { %s1083_s9 = sshll.u32 %s1483_s8, 4  ;;  %s1084_s9 = int_to_ptr.vmem [resolvable:$true] %s1083_s9 }
 0x175   : > { %s1393_s10 = scalar_lea.vmem %s1084_s9, 16  ;;  %s1399_s30 = scalar_lea.vmem %s1084_s9, 32 }
 0x176   : > { %p1394_p3 = scmp.ne.s32.totalorder %s1084_s9, %s1393_s10  ;;  %p1400_p6 = scmp.lt.s32.totalorder %s1084_s9, %s1084_s9 }
 0x177   : > { %p1401_p8 = scmp.lt.s32.totalorder %s1399_s30, %s1393_s10 }
 0x178   : > { %p1395_p4 = pnand %p1394_p3, %p2106_p10 }
 0x179   : > { %p1402_p11 = por %p1401_p8, %p1400_p6 }
 0x17a   : > { %p1396_p5 = pneg %p1395_p4 }
 0x17c   : > { %p1403_p12 = pnand %p1402_p11, %p1396_p5 }
 0x17e   : > { %1406 = shalt.err (!%p1403_p12)
}
 0x17f   : > { %1223 = dma.vmem_to_hbm [thread:$0]  (%p2106_p10), %s1084_s9, 16, %s2142_s3, [#allocation9]  }
 0x180   : > { %1450 = dma.done.wait (%p2106_p10), [#allocation9], 16  }
 0x181   : > { %1452 = vsyncadd (%p2106_p10), [#allocation9], 4294967280 }
 0x182 PF: > { %s21_s17 = sadd.s32 1, %s1475_s17   ;;  %s2178_s12 = smov %s1459_s13 }
 0x183   : > { %p18_p13 = scmp.ge.s32.totalorder %s21_s17, 4   ;;  %s2179_s13 = smov %s1463_s14 }
 0x184   : > { %s2180_s14 = smov %s1555_s24  ;;  %s2181_s15 = smov %s1471_s16 }
 0x185   : > { %s2182_s16 = smov %s2184_s19  ;;  %20 = sbr.rel (!%p18_p13) target bundleno = 7 (0x7), region = 108 }
 0x18a   :  { %1103 = vsyncpa [#allocation8], 1 }
 0x18b   :  { %1105 = vsyncpa [#allocation8 + $0x1], 1 }
 0x18c   :  { %1106 = vsyncpa [#allocation11], 1 }
 0x18d   :  { %1108 = vsyncpa [#allocation11 + $0x1], 1 }
 0x18e   :  { %1109 = vsyncpa [#allocation9], 1 }
 0x18f   :  { %1111 = vsyncpa [#allocation9 + $0x1], 1 }

</bundles_post_ra>
